<compile_context>
chip_gen: v7x
topology: tpu7x:2x2x1
jax: 0.10.0
libtpu: 0.0.40
codegen_flags: <defaults>
</compile_context>

<pallas_src>
from functools import partial

import jax
import jax.numpy as jnp
from jax import lax
from jax.experimental import pallas as pl
from jax.experimental.pallas import tpu as pltpu

BN_EPS = 1e-5
TILE_ROWS = 512        # row tile (multiple of 8); sized to stay well inside the
                       # default 32 MiB scoped-VMEM limit even on v7x (64 MiB VMEM)
STATS_ROWS = 8         # sublane-aligned stats accumulator (row 0 = sum, row 1 = sum^2)


# --------------------------------------------------------------------------- #
# Pallas kernels
# --------------------------------------------------------------------------- #
def _conv_stats_kernel(taps_ref, w_ref, z_ref, stats_ref):
    """One row-tile of z = taps @ W (MXU, f32 accumulation) + BN stat accumulation.

    taps_ref : (TR, Kp)      im2col taps (channels-last, lane-dense, maybe bf16)
    w_ref    : (Kp, Cp)      fused conv weight
    z_ref    : (TR, Cp)      conv output tile (f32)
    stats_ref: (8,  Cp)      resident accumulator: row0 = sum(z), row1 = sum(z^2)
    """
    @pl.when(pl.program_id(0) == 0)
    def _init():
        stats_ref[...] = jnp.zeros_like(stats_ref)

    z = jnp.dot(taps_ref[...], w_ref[...], preferred_element_type=jnp.float32)
    z_ref[...] = z
    stats_ref[pl.ds(0, 1), :] = stats_ref[pl.ds(0, 1), :] + jnp.sum(z, axis=0, keepdims=True)
    stats_ref[pl.ds(1, 1), :] = stats_ref[pl.ds(1, 1), :] + jnp.sum(z * z, axis=0, keepdims=True)


def _scale_shift_relu_kernel(z_ref, sc_ref, sh_ref, o_ref):
    """BN (folded to scale/shift) + ReLU for one row tile."""
    o_ref[...] = jnp.maximum(z_ref[...] * sc_ref[...] + sh_ref[...], 0.0)


def _bn_add_relu_kernel(z_ref, sc_ref, sh_ref, r_ref, rsc_ref, rsh_ref, o_ref):
    """Final ReLU( BN(z) + BN_or_identity(residual) ) for one row tile."""
    a = z_ref[...] * sc_ref[...] + sh_ref[...]
    b = r_ref[...] * rsc_ref[...] + rsh_ref[...]
    o_ref[...] = jnp.maximum(a + b, 0.0)


# --------------------------------------------------------------------------- #
# Wrappers around pallas_call
# --------------------------------------------------------------------------- #
def _round_up(x, m):
    return (x + m - 1) // m * m


def _row_tiling(r, tile_rows=TILE_ROWS):
    tr = min(tile_rows, _round_up(r, 8))
    rp = _round_up(r, tr)
    return tr, rp


def _conv_stats(taps, w_mat, r_real, rp, tr, cp, mm_dtype):
    """Tiled conv-as-matmul + per-channel sum/sum^2. Returns z (rp,cp), mean, var."""
    r, k = taps.shape
    kp = _round_up(k, 128)
    cout = w_mat.shape[1]
    taps_p = jnp.pad(taps, ((0, rp - r), (0, kp - k))).astype(mm_dtype)
    w_p = jnp.pad(w_mat, ((0, kp - k), (0, cp - cout))).astype(mm_dtype)

    z, stats = pl.pallas_call(
        _conv_stats_kernel,
        out_shape=(jax.ShapeDtypeStruct((rp, cp), jnp.float32),
                   jax.ShapeDtypeStruct((STATS_ROWS, cp), jnp.float32)),
        grid=(rp // tr,),
        in_specs=[
            pl.BlockSpec((tr, kp), lambda i: (i, 0)),
            pl.BlockSpec((kp, cp), lambda i: (0, 0)),
        ],
        out_specs=(
            pl.BlockSpec((tr, cp), lambda i: (i, 0)),
            pl.BlockSpec((STATS_ROWS, cp), lambda i: (0, 0)),
        ),
        compiler_params=pltpu.CompilerParams(
            dimension_semantics=("arbitrary",)),   # stats accumulate across row tiles
    )(taps_p, w_p)

    mean = stats[0] / r_real                       # padded rows contribute zeros
    var = stats[1] / r_real - mean * mean          # biased variance (training-mode BN)
    return z, mean, var


def _bn_scale_shift(mean, var, gamma, beta, cp):
    """Fold BN (batch stats) into per-channel scale/shift; pad channels to cp."""
    g = jnp.pad(gamma, (0, cp - gamma.shape[0]))
    b = jnp.pad(beta, (0, cp - beta.shape[0]))
    inv = lax.rsqrt(var + BN_EPS)
    scale = g * inv                                # padded channels: gamma==0 -> scale 0
    shift = b - mean * scale
    return scale.reshape(1, cp), shift.reshape(1, cp)


def _scale_shift_relu(z, scale, shift, tr):
    rp, cp = z.shape
    return pl.pallas_call(
        _scale_shift_relu_kernel,
        out_shape=jax.ShapeDtypeStruct((rp, cp), jnp.float32),
        grid=(rp // tr,),
        in_specs=[
            pl.BlockSpec((tr, cp), lambda i: (i, 0)),
            pl.BlockSpec((1, cp), lambda i: (0, 0)),
            pl.BlockSpec((1, cp), lambda i: (0, 0)),
        ],
        out_specs=pl.BlockSpec((tr, cp), lambda i: (i, 0)),
        compiler_params=pltpu.CompilerParams(
            dimension_semantics=("parallel",)),    # shards across TCs on v7x
    )(z, scale, shift)


def _bn_add_relu(z, sc, sh, res, rsc, rsh, tr):
    rp, cp = z.shape
    return pl.pallas_call(
        _bn_add_relu_kernel,
        out_shape=jax.ShapeDtypeStruct((rp, cp), jnp.float32),
        grid=(rp // tr,),
        in_specs=[
            pl.BlockSpec((tr, cp), lambda i: (i, 0)),
            pl.BlockSpec((1, cp), lambda i: (0, 0)),
            pl.BlockSpec((1, cp), lambda i: (0, 0)),
            pl.BlockSpec((tr, cp), lambda i: (i, 0)),
            pl.BlockSpec((1, cp), lambda i: (0, 0)),
            pl.BlockSpec((1, cp), lambda i: (0, 0)),
        ],
        out_specs=pl.BlockSpec((tr, cp), lambda i: (i, 0)),
        compiler_params=pltpu.CompilerParams(
            dimension_semantics=("parallel",)),
    )(z, sc, sh, res, rsc, rsh)


def _im2col(x_nhwc, stride):
    """3x3 / pad=1 im2col; taps concatenated channels-last -> (R, 9*C). Glue only."""
    n, h, w, c = x_nhwc.shape
    xp = jnp.pad(x_nhwc, ((0, 0), (1, 1), (1, 1), (0, 0)))
    ho = (h - 1) // stride + 1
    wo = (w - 1) // stride + 1
    cols = []
    for kh in range(3):
        for kw in range(3):
            t = xp[:, kh:kh + (ho - 1) * stride + 1:stride,
                      kw:kw + (wo - 1) * stride + 1:stride, :]
            cols.append(t.reshape(n * ho * wo, c))
    return jnp.concatenate(cols, axis=-1), ho, wo


# --------------------------------------------------------------------------- #
# BasicBlock forward
# --------------------------------------------------------------------------- #
def basicblock_forward(x_nchw, params, *, stride=2,
                       mm_dtype=jnp.bfloat16, tile_rows=TILE_ROWS):
    """BasicBlock forward.  Input/output are NCHW (PyTorch layout)."""
    n, cin, h, w = x_nchw.shape
    cout = params["g1"].shape[0]
    cp = _round_up(cout, 128)
    x = jnp.transpose(x_nchw, (0, 2, 3, 1)).astype(jnp.float32)   # NHWC

    # ---- residual branch: conv1 (3x3, stride) -> BN1 -> ReLU ----------------
    taps1, ho, wo = _im2col(x, stride)
    r = n * ho * wo
    tr, rp = _row_tiling(r, tile_rows)

    z1, mean1, var1 = _conv_stats(taps1, params["w1_mat"], r, rp, tr, cp, mm_dtype)
    sc1, sh1 = _bn_scale_shift(mean1, var1, params["g1"], params["b1"], cp)
    y1 = _scale_shift_relu(z1, sc1, sh1, tr)                       # (rp, cp), padded ch == 0

    # ---- conv2 (3x3, stride 1) -> BN2 (stats only) ---------------------------
    y1_img = y1[:r].reshape(n, ho, wo, cp)                         # keep lane-dense (128-padded)
    taps2, _, _ = _im2col(y1_img, 1)                               # (r, 9*cp)
    z2, mean2, var2 = _conv_stats(taps2, params["w2_mat"], r, rp, tr, cp, mm_dtype)
    sc2, sh2 = _bn_scale_shift(mean2, var2, params["g2"], params["b2"], cp)

    # ---- shortcut branch -----------------------------------------------------
    if params.get("ws_mat") is not None:
        xs = x[:, 0:(ho - 1) * stride + 1:stride,
                  0:(wo - 1) * stride + 1:stride, :].reshape(r, cin)
        zs, means, vars_ = _conv_stats(xs, params["ws_mat"], r, rp, tr, cp, mm_dtype)
        scs, shs = _bn_scale_shift(means, vars_, params["gs"], params["bs"], cp)
        res = zs
    else:
        # identity shortcut (stride==1, Cin==Cout): pass x rows through unchanged
        res = jnp.pad(x.reshape(r, cin), ((0, rp - r), (0, cp - cin)))
        scs = jnp.ones((1, cp), jnp.float32)
        shs = jnp.zeros((1, cp), jnp.float32)

    # ---- final: ReLU( BN2(z2) + shortcut ) ------------------------------------
    out = _bn_add_relu(z2, sc2, sh2, res, scs, shs, tr)            # (rp, cp)
    out = out[:r, :cout].reshape(n, ho, wo, cout)
    return jnp.transpose(out, (0, 3, 1, 2))                        # back to NCHW


# --------------------------------------------------------------------------- #
# Parameters (PyTorch layouts -> fused-matmul kernel layouts)
# --------------------------------------------------------------------------- #
def init_params(key, c_in, c_out, stride, use_conv=False):
    cp = _round_up(c_out, 128)
    ks = jax.random.split(key, 9)
    s1 = 1.0 / (3.0 * (c_in ** 0.5))
    s2 = 1.0 / (3.0 * (c_out ** 0.5))
    w1 = jax.random.normal(ks[0], (c_out, c_in, 3, 3), jnp.float32) * s1
    w2 = jax.random.normal(ks[1], (c_out, c_out, 3, 3), jnp.float32) * s2
    g1 = 1.0 + 0.1 * jax.random.normal(ks[2], (c_out,), jnp.float32)
    b1 = 0.1 * jax.random.normal(ks[3], (c_out,), jnp.float32)
    g2 = 1.0 + 0.1 * jax.random.normal(ks[4], (c_out,), jnp.float32)
    b2 = 0.1 * jax.random.normal(ks[5], (c_out,), jnp.float32)
    has_sc = (stride != 1) or (c_in != c_out) or use_conv

    # fused matmul weights: column order of taps is (kh*3+kw)*C + ci
    w1_mat = jnp.transpose(w1, (2, 3, 1, 0)).reshape(9 * c_in, c_out)
    w2_k = jnp.transpose(w2, (2, 3, 1, 0))                         # (3,3,Cout,Cout)
    w2_k = jnp.pad(w2_k, ((0, 0), (0, 0), (0, cp - c_out), (0, 0)))  # match y1's padded channels
    w2_mat = w2_k.reshape(9 * cp, c_out)

    kernel_p = {"w1_mat": w1_mat, "w2_mat": w2_mat,
                "g1": g1, "b1": b1, "g2": g2, "b2": b2, "ws_mat": None}
    torch_p = {"w1": w1, "w2": w2, "g1": g1, "b1": b1, "g2": g2, "b2": b2,
               "has_sc": has_sc}
    if has_sc:
        ws = jax.random.normal(ks[6], (c_out, c_in, 1, 1), jnp.float32) / (c_in ** 0.5)
        gs = 1.0 + 0.1 * jax.random.normal(ks[7], (c_out,), jnp.float32)
        bs = 0.1 * jax.random.normal(ks[8], (c_out,), jnp.float32)
        kernel_p.update({"ws_mat": jnp.transpose(ws[:, :, 0, 0], (1, 0)),
                         "gs": gs, "bs": bs})
        torch_p.update({"ws": ws, "gs": gs, "bs": bs})
    return kernel_p, torch_p


# --------------------------------------------------------------------------- #
# Independent pure-JAX reference (for correctness check)
# --------------------------------------------------------------------------- #
def _bn_ref(z, gamma, beta):
    mean = jnp.mean(z, axis=(0, 2, 3), keepdims=True)
    var = jnp.mean((z - mean) ** 2, axis=(0, 2, 3), keepdims=True)
    zn = (z - mean) / jnp.sqrt(var + BN_EPS)
    return zn * gamma.reshape(1, -1, 1, 1) + beta.reshape(1, -1, 1, 1)


def basicblock_reference(x, tp, stride):
    dn = ("NCHW", "OIHW", "NCHW")
    y = lax.conv_general_dilated(x, tp["w1"], (stride, stride), ((1, 1), (1, 1)),
                                 dimension_numbers=dn)
    y = jnp.maximum(_bn_ref(y, tp["g1"], tp["b1"]), 0.0)
    y = lax.conv_general_dilated(y, tp["w2"], (1, 1), ((1, 1), (1, 1)),
                                 dimension_numbers=dn)
    y = _bn_ref(y, tp["g2"], tp["b2"])
    if tp["has_sc"]:
        s = lax.conv_general_dilated(x, tp["ws"], (stride, stride), ((0, 0), (0, 0)),
                                     dimension_numbers=dn)
        s = _bn_ref(s, tp["gs"], tp["bs"])
    else:
        s = x
    return jnp.maximum(y + s, 0.0)


# --------------------------------------------------------------------------- #
if __name__ == "__main__":
    N, C_IN, C_OUT, H, W, STRIDE = 2, 4, 8, 16, 16, 2
    key = jax.random.PRNGKey(0)
    kx, kp = jax.random.split(key)
    x = jax.random.normal(kx, (N, C_IN, H, W), jnp.float32)
    params, torch_params = init_params(kp, C_IN, C_OUT, STRIDE)
    ref = basicblock_reference(x, torch_params, STRIDE)

    # f32-matmul path: tight tolerance vs the pure-JAX reference.
    fwd32 = jax.jit(partial(basicblock_forward, stride=STRIDE, mm_dtype=jnp.float32))
    out32 = jax.block_until_ready(fwd32(x, params))
    assert out32.shape == (N, C_OUT, H // STRIDE, W // STRIDE), out32.shape
    assert jnp.allclose(out32, ref, atol=2e-4, rtol=2e-3), \
        float(jnp.max(jnp.abs(out32 - ref)))

    # bf16-matmul path (MXU-friendly on v6e/v7x, f32 accumulation): looser tolerance.
    fwd16 = jax.jit(partial(basicblock_forward, stride=STRIDE, mm_dtype=jnp.bfloat16))
    out16 = jax.block_until_ready(fwd16(x, params))
    assert jnp.allclose(out16, ref, atol=5e-2, rtol=5e-2), \
        float(jnp.max(jnp.abs(out16 - ref)))

    # identity-shortcut configuration (stride=1, Cin==Cout).
    params_id, torch_id = init_params(jax.random.PRNGKey(1), C_IN, C_IN, 1)
    fwd_id = jax.jit(partial(basicblock_forward, stride=1, mm_dtype=jnp.float32))
    out_id = jax.block_until_ready(fwd_id(x, params_id))
    ref_id = basicblock_reference(x, torch_id, 1)
    assert out_id.shape == (N, C_IN, H, W), out_id.shape
    assert jnp.allclose(out_id, ref_id, atol=2e-4, rtol=2e-3), \
        float(jnp.max(jnp.abs(out_id - ref_id)))

    print("KERNEL_OK")
</pallas_src>

<mosaic_0001>
module attributes {stable_mosaic.version = 11 : i64} {
  func.func @_conv_stats_kernel(%arg0: i32, %arg1: memref<128x128xf32, #tpu.memory_space<vmem>>, %arg2: memref<128x128xf32, #tpu.memory_space<vmem>>, %arg3: memref<128x128xf32, #tpu.memory_space<vmem>>, %arg4: memref<8x128xf32, #tpu.memory_space<vmem>>) attributes {dimension_semantics = [#tpu.dimension_semantics<arbitrary>], iteration_bounds = array<i64: 1>, scalar_prefetch = 0 : i64, scratch_operands = 0 : i64, tpu.core_type = #tpu.core_type<tc>, window_params = [{transform_indices = @transform_0, window_bounds = array<i64: 128, 128>}, {pipeline_mode = #tpu.pipeline_mode<synchronous>, transform_indices = @transform_1, window_bounds = array<i64: 128, 128>}, {transform_indices = @transform_2, window_bounds = array<i64: 128, 128>}, {pipeline_mode = #tpu.pipeline_mode<synchronous>, transform_indices = @transform_3, window_bounds = array<i64: 8, 128>}]} {
    %c0_i32 = arith.constant 0 : i32
    %0 = arith.cmpi eq, %arg0, %c0_i32 : i32
    %1 = arith.extui %0 : i1 to i32
    %c0_i32_0 = arith.constant 0 : i32
    %2 = arith.cmpi ne, %1, %c0_i32_0 : i32
    scf.if %2 {
      %cst_15 = arith.constant 0.000000e+00 : f32
      %18 = vector.broadcast %cst_15 : f32 to vector<8x128xf32>
      %c0_16 = arith.constant 0 : index
      %c0_17 = arith.constant 0 : index
      %19 = vector.load %arg4[%c0_16, %c0_17] : memref<8x128xf32, #tpu.memory_space<vmem>>, vector<8x128xf32>
      tpu.vector_store %arg4[%c0_16, %c0_17], %18 {strides = array<i32>} : memref<8x128xf32, #tpu.memory_space<vmem>>, vector<8x128xf32>,
    } else {
    }
    %c0 = arith.constant 0 : index
    %c0_1 = arith.constant 0 : index
    %3 = vector.load %arg1[%c0, %c0_1] : memref<128x128xf32, #tpu.memory_space<vmem>>, vector<128x128xf32>
    %c0_2 = arith.constant 0 : index
    %c0_3 = arith.constant 0 : index
    %4 = vector.load %arg2[%c0_2, %c0_3] : memref<128x128xf32, #tpu.memory_space<vmem>>, vector<128x128xf32>
    %cst = arith.constant dense<0.000000e+00> : vector<128x128xf32>
    %5 = tpu.matmul %3, %4, %cst {dimension_numbers = #tpu.dot_dimension_numbers<[1], [0], [0], [1], [0, 0, 1, 1], [], []>} : vector<128x128xf32>, vector<128x128xf32>, vector<128x128xf32> -> vector<128x128xf32>
    %c0_4 = arith.constant 0 : index
    %c0_5 = arith.constant 0 : index
    %6 = vector.load %arg3[%c0_4, %c0_5] : memref<128x128xf32, #tpu.memory_space<vmem>>, vector<128x128xf32>
    tpu.vector_store %arg3[%c0_4, %c0_5], %5 {strides = array<i32>} : memref<128x128xf32, #tpu.memory_space<vmem>>, vector<128x128xf32>,
    %c0_6 = arith.constant 0 : index
    %c0_7 = arith.constant 0 : index
    %7 = vector.load %arg4[%c0_6, %c0_7] : memref<8x128xf32, #tpu.memory_space<vmem>>, vector<1x128xf32>
    %cst_8 = arith.constant dense<0.000000e+00> : vector<128xf32>
    %8 = vector.multi_reduction <add>, %5, %cst_8 [0] : vector<128x128xf32> to vector<128xf32>
    %9 = vector.shape_cast %8 : vector<128xf32> to vector<1x128xf32>
    %10 = arith.addf %7, %9 : vector<1x128xf32>
    %c0_9 = arith.constant 0 : index
    %c0_10 = arith.constant 0 : index
    %11 = vector.load %arg4[%c0_9, %c0_10] : memref<8x128xf32, #tpu.memory_space<vmem>>, vector<1x128xf32>
    tpu.vector_store %arg4[%c0_9, %c0_10], %10 {strides = array<i32>} : memref<8x128xf32, #tpu.memory_space<vmem>>, vector<1x128xf32>,
    %c1 = arith.constant 1 : index
    %c0_11 = arith.constant 0 : index
    %12 = vector.load %arg4[%c1, %c0_11] : memref<8x128xf32, #tpu.memory_space<vmem>>, vector<1x128xf32>
    %13 = arith.mulf %5, %5 : vector<128x128xf32>
    %cst_12 = arith.constant dense<0.000000e+00> : vector<128xf32>
    %14 = vector.multi_reduction <add>, %13, %cst_12 [0] : vector<128x128xf32> to vector<128xf32>
    %15 = vector.shape_cast %14 : vector<128xf32> to vector<1x128xf32>
    %16 = arith.addf %12, %15 : vector<1x128xf32>
    %c1_13 = arith.constant 1 : index
    %c0_14 = arith.constant 0 : index
    %17 = vector.load %arg4[%c1_13, %c0_14] : memref<8x128xf32, #tpu.memory_space<vmem>>, vector<1x128xf32>
    tpu.vector_store %arg4[%c1_13, %c0_14], %16 {strides = array<i32>} : memref<8x128xf32, #tpu.memory_space<vmem>>, vector<1x128xf32>,
    return
  }
  func.func @transform_0(%arg0: i32) -> (i32, i32) {
    %c0_i32 = arith.constant 0 : i32
    %c0_i32_0 = arith.constant 0 : i32
    return %arg0, %c0_i32 : i32, i32
  }
  func.func @transform_1(%arg0: i32) -> (i32, i32) {
    %c0_i32 = arith.constant 0 : i32
    %c0_i32_0 = arith.constant 0 : i32
    %c0_i32_1 = arith.constant 0 : i32
    return %c0_i32, %c0_i32_0 : i32, i32
  }
  func.func @transform_2(%arg0: i32) -> (i32, i32) {
    %c0_i32 = arith.constant 0 : i32
    %c0_i32_0 = arith.constant 0 : i32
    return %arg0, %c0_i32 : i32, i32
  }
  func.func @transform_3(%arg0: i32) -> (i32, i32) {
    %c0_i32 = arith.constant 0 : i32
    %c0_i32_0 = arith.constant 0 : i32
    %c0_i32_1 = arith.constant 0 : i32
    return %c0_i32, %c0_i32_0 : i32, i32
  }
}

module attributes {stable_mosaic.version = 11 : i64} {
  func.func @_scale_shift_relu_kernel(%arg0: i32, %arg1: memref<128x128xf32, #tpu.memory_space<vmem>>, %arg2: memref<1x128xf32, #tpu.memory_space<vmem>>, %arg3: memref<1x128xf32, #tpu.memory_space<vmem>>, %arg4: memref<128x128xf32, #tpu.memory_space<vmem>>) attributes {dimension_semantics = [#tpu.dimension_semantics<parallel>], iteration_bounds = array<i64: 1>, scalar_prefetch = 0 : i64, scratch_operands = 0 : i64, tpu.core_type = #tpu.core_type<tc>, window_params = [{transform_indices = @transform_0, window_bounds = array<i64: 128, 128>}, {pipeline_mode = #tpu.pipeline_mode<synchronous>, transform_indices = @transform_1, window_bounds = array<i64: 1, 128>}, {pipeline_mode = #tpu.pipeline_mode<synchronous>, transform_indices = @transform_2, window_bounds = array<i64: 1, 128>}, {transform_indices = @transform_3, window_bounds = array<i64: 128, 128>}]} {
    %c0 = arith.constant 0 : index
    %c0_0 = arith.constant 0 : index
    %0 = vector.load %arg1[%c0, %c0_0] : memref<128x128xf32, #tpu.memory_space<vmem>>, vector<128x128xf32>
    %c0_1 = arith.constant 0 : index
    %c0_2 = arith.constant 0 : index
    %1 = vector.load %arg2[%c0_1, %c0_2] : memref<1x128xf32, #tpu.memory_space<vmem>>, vector<1x128xf32>
    %2 = vector.broadcast %1 : vector<1x128xf32> to vector<128x128xf32>
    %3 = arith.mulf %0, %2 : vector<128x128xf32>
    %c0_3 = arith.constant 0 : index
    %c0_4 = arith.constant 0 : index
    %4 = vector.load %arg3[%c0_3, %c0_4] : memref<1x128xf32, #tpu.memory_space<vmem>>, vector<1x128xf32>
    %5 = vector.broadcast %4 : vector<1x128xf32> to vector<128x128xf32>
    %6 = arith.addf %3, %5 : vector<128x128xf32>
    %cst = arith.constant 0.000000e+00 : f32
    %7 = vector.broadcast %cst : f32 to vector<128x128xf32>
    %8 = arith.maximumf %6, %7 : vector<128x128xf32>
    %c0_5 = arith.constant 0 : index
    %c0_6 = arith.constant 0 : index
    %9 = vector.load %arg4[%c0_5, %c0_6] : memref<128x128xf32, #tpu.memory_space<vmem>>, vector<128x128xf32>
    tpu.vector_store %arg4[%c0_5, %c0_6], %8 {strides = array<i32>} : memref<128x128xf32, #tpu.memory_space<vmem>>, vector<128x128xf32>,
    return
  }
  func.func @transform_0(%arg0: i32) -> (i32, i32) {
    %c0_i32 = arith.constant 0 : i32
    %c0_i32_0 = arith.constant 0 : i32
    return %arg0, %c0_i32 : i32, i32
  }
  func.func @transform_1(%arg0: i32) -> (i32, i32) {
    %c0_i32 = arith.constant 0 : i32
    %c0_i32_0 = arith.constant 0 : i32
    %c0_i32_1 = arith.constant 0 : i32
    return %c0_i32, %c0_i32_0 : i32, i32
  }
  func.func @transform_2(%arg0: i32) -> (i32, i32) {
    %c0_i32 = arith.constant 0 : i32
    %c0_i32_0 = arith.constant 0 : i32
    %c0_i32_1 = arith.constant 0 : i32
    return %c0_i32, %c0_i32_0 : i32, i32
  }
  func.func @transform_3(%arg0: i32) -> (i32, i32) {
    %c0_i32 = arith.constant 0 : i32
    %c0_i32_0 = arith.constant 0 : i32
    return %arg0, %c0_i32 : i32, i32
  }
}

module attributes {stable_mosaic.version = 11 : i64} {
  func.func @_conv_stats_kernel(%arg0: i32, %arg1: memref<128x1152xf32, #tpu.memory_space<vmem>>, %arg2: memref<1152x128xf32, #tpu.memory_space<vmem>>, %arg3: memref<128x128xf32, #tpu.memory_space<vmem>>, %arg4: memref<8x128xf32, #tpu.memory_space<vmem>>) attributes {dimension_semantics = [#tpu.dimension_semantics<arbitrary>], iteration_bounds = array<i64: 1>, scalar_prefetch = 0 : i64, scratch_operands = 0 : i64, tpu.core_type = #tpu.core_type<tc>, window_params = [{transform_indices = @transform_0, window_bounds = array<i64: 128, 1152>}, {pipeline_mode = #tpu.pipeline_mode<synchronous>, transform_indices = @transform_1, window_bounds = array<i64: 1152, 128>}, {transform_indices = @transform_2, window_bounds = array<i64: 128, 128>}, {pipeline_mode = #tpu.pipeline_mode<synchronous>, transform_indices = @transform_3, window_bounds = array<i64: 8, 128>}]} {
    %c0_i32 = arith.constant 0 : i32
    %0 = arith.cmpi eq, %arg0, %c0_i32 : i32
    %1 = arith.extui %0 : i1 to i32
    %c0_i32_0 = arith.constant 0 : i32
    %2 = arith.cmpi ne, %1, %c0_i32_0 : i32
    scf.if %2 {
      %cst_15 = arith.constant 0.000000e+00 : f32
      %18 = vector.broadcast %cst_15 : f32 to vector<8x128xf32>
      %c0_16 = arith.constant 0 : index
      %c0_17 = arith.constant 0 : index
      %19 = vector.load %arg4[%c0_16, %c0_17] : memref<8x128xf32, #tpu.memory_space<vmem>>, vector<8x128xf32>
      tpu.vector_store %arg4[%c0_16, %c0_17], %18 {strides = array<i32>} : memref<8x128xf32, #tpu.memory_space<vmem>>, vector<8x128xf32>,
    } else {
    }
    %c0 = arith.constant 0 : index
    %c0_1 = arith.constant 0 : index
    %3 = vector.load %arg1[%c0, %c0_1] : memref<128x1152xf32, #tpu.memory_space<vmem>>, vector<128x1152xf32>
    %c0_2 = arith.constant 0 : index
    %c0_3 = arith.constant 0 : index
    %4 = vector.load %arg2[%c0_2, %c0_3] : memref<1152x128xf32, #tpu.memory_space<vmem>>, vector<1152x128xf32>
    %cst = arith.constant dense<0.000000e+00> : vector<128x128xf32>
    %5 = tpu.matmul %3, %4, %cst {dimension_numbers = #tpu.dot_dimension_numbers<[1], [0], [0], [1], [0, 0, 1, 1], [], []>} : vector<128x1152xf32>, vector<1152x128xf32>, vector<128x128xf32> -> vector<128x128xf32>
    %c0_4 = arith.constant 0 : index
    %c0_5 = arith.constant 0 : index
    %6 = vector.load %arg3[%c0_4, %c0_5] : memref<128x128xf32, #tpu.memory_space<vmem>>, vector<128x128xf32>
    tpu.vector_store %arg3[%c0_4, %c0_5], %5 {strides = array<i32>} : memref<128x128xf32, #tpu.memory_space<vmem>>, vector<128x128xf32>,
    %c0_6 = arith.constant 0 : index
    %c0_7 = arith.constant 0 : index
    %7 = vector.load %arg4[%c0_6, %c0_7] : memref<8x128xf32, #tpu.memory_space<vmem>>, vector<1x128xf32>
    %cst_8 = arith.constant dense<0.000000e+00> : vector<128xf32>
    %8 = vector.multi_reduction <add>, %5, %cst_8 [0] : vector<128x128xf32> to vector<128xf32>
    %9 = vector.shape_cast %8 : vector<128xf32> to vector<1x128xf32>
    %10 = arith.addf %7, %9 : vector<1x128xf32>
    %c0_9 = arith.constant 0 : index
    %c0_10 = arith.constant 0 : index
    %11 = vector.load %arg4[%c0_9, %c0_10] : memref<8x128xf32, #tpu.memory_space<vmem>>, vector<1x128xf32>
    tpu.vector_store %arg4[%c0_9, %c0_10], %10 {strides = array<i32>} : memref<8x128xf32, #tpu.memory_space<vmem>>, vector<1x128xf32>,
    %c1 = arith.constant 1 : index
    %c0_11 = arith.constant 0 : index
    %12 = vector.load %arg4[%c1, %c0_11] : memref<8x128xf32, #tpu.memory_space<vmem>>, vector<1x128xf32>
    %13 = arith.mulf %5, %5 : vector<128x128xf32>
    %cst_12 = arith.constant dense<0.000000e+00> : vector<128xf32>
    %14 = vector.multi_reduction <add>, %13, %cst_12 [0] : vector<128x128xf32> to vector<128xf32>
    %15 = vector.shape_cast %14 : vector<128xf32> to vector<1x128xf32>
    %16 = arith.addf %12, %15 : vector<1x128xf32>
    %c1_13 = arith.constant 1 : index
    %c0_14 = arith.constant 0 : index
    %17 = vector.load %arg4[%c1_13, %c0_14] : memref<8x128xf32, #tpu.memory_space<vmem>>, vector<1x128xf32>
    tpu.vector_store %arg4[%c1_13, %c0_14], %16 {strides = array<i32>} : memref<8x128xf32, #tpu.memory_space<vmem>>, vector<1x128xf32>,
    return
  }
  func.func @transform_0(%arg0: i32) -> (i32, i32) {
    %c0_i32 = arith.constant 0 : i32
    %c0_i32_0 = arith.constant 0 : i32
    return %arg0, %c0_i32 : i32, i32
  }
  func.func @transform_1(%arg0: i32) -> (i32, i32) {
    %c0_i32 = arith.constant 0 : i32
    %c0_i32_0 = arith.constant 0 : i32
    %c0_i32_1 = arith.constant 0 : i32
    return %c0_i32, %c0_i32_0 : i32, i32
  }
  func.func @transform_2(%arg0: i32) -> (i32, i32) {
    %c0_i32 = arith.constant 0 : i32
    %c0_i32_0 = arith.constant 0 : i32
    return %arg0, %c0_i32 : i32, i32
  }
  func.func @transform_3(%arg0: i32) -> (i32, i32) {
    %c0_i32 = arith.constant 0 : i32
    %c0_i32_0 = arith.constant 0 : i32
    %c0_i32_1 = arith.constant 0 : i32
    return %c0_i32, %c0_i32_0 : i32, i32
  }
}

module attributes {stable_mosaic.version = 11 : i64} {
  func.func @_bn_add_relu_kernel(%arg0: i32, %arg1: memref<128x128xf32, #tpu.memory_space<vmem>>, %arg2: memref<1x128xf32, #tpu.memory_space<vmem>>, %arg3: memref<1x128xf32, #tpu.memory_space<vmem>>, %arg4: memref<128x128xf32, #tpu.memory_space<vmem>>, %arg5: memref<1x128xf32, #tpu.memory_space<vmem>>, %arg6: memref<1x128xf32, #tpu.memory_space<vmem>>, %arg7: memref<128x128xf32, #tpu.memory_space<vmem>>) attributes {dimension_semantics = [#tpu.dimension_semantics<parallel>], iteration_bounds = array<i64: 1>, scalar_prefetch = 0 : i64, scratch_operands = 0 : i64, tpu.core_type = #tpu.core_type<tc>, window_params = [{transform_indices = @transform_0, window_bounds = array<i64: 128, 128>}, {pipeline_mode = #tpu.pipeline_mode<synchronous>, transform_indices = @transform_1, window_bounds = array<i64: 1, 128>}, {pipeline_mode = #tpu.pipeline_mode<synchronous>, transform_indices = @transform_2, window_bounds = array<i64: 1, 128>}, {transform_indices = @transform_3, window_bounds = array<i64: 128, 128>}, {pipeline_mode = #tpu.pipeline_mode<synchronous>, transform_indices = @transform_4, window_bounds = array<i64: 1, 128>}, {pipeline_mode = #tpu.pipeline_mode<synchronous>, transform_indices = @transform_5, window_bounds = array<i64: 1, 128>}, {transform_indices = @transform_6, window_bounds = array<i64: 128, 128>}]} {
    %c0 = arith.constant 0 : index
    %c0_0 = arith.constant 0 : index
    %0 = vector.load %arg1[%c0, %c0_0] : memref<128x128xf32, #tpu.memory_space<vmem>>, vector<128x128xf32>
    %c0_1 = arith.constant 0 : index
    %c0_2 = arith.constant 0 : index
    %1 = vector.load %arg2[%c0_1, %c0_2] : memref<1x128xf32, #tpu.memory_space<vmem>>, vector<1x128xf32>
    %2 = vector.broadcast %1 : vector<1x128xf32> to vector<128x128xf32>
    %3 = arith.mulf %0, %2 : vector<128x128xf32>
    %c0_3 = arith.constant 0 : index
    %c0_4 = arith.constant 0 : index
    %4 = vector.load %arg3[%c0_3, %c0_4] : memref<1x128xf32, #tpu.memory_space<vmem>>, vector<1x128xf32>
    %5 = vector.broadcast %4 : vector<1x128xf32> to vector<128x128xf32>
    %6 = arith.addf %3, %5 : vector<128x128xf32>
    %c0_5 = arith.constant 0 : index
    %c0_6 = arith.constant 0 : index
    %7 = vector.load %arg4[%c0_5, %c0_6] : memref<128x128xf32, #tpu.memory_space<vmem>>, vector<128x128xf32>
    %c0_7 = arith.constant 0 : index
    %c0_8 = arith.constant 0 : index
    %8 = vector.load %arg5[%c0_7, %c0_8] : memref<1x128xf32, #tpu.memory_space<vmem>>, vector<1x128xf32>
    %9 = vector.broadcast %8 : vector<1x128xf32> to vector<128x128xf32>
    %10 = arith.mulf %7, %9 : vector<128x128xf32>
    %c0_9 = arith.constant 0 : index
    %c0_10 = arith.constant 0 : index
    %11 = vector.load %arg6[%c0_9, %c0_10] : memref<1x128xf32, #tpu.memory_space<vmem>>, vector<1x128xf32>
    %12 = vector.broadcast %11 : vector<1x128xf32> to vector<128x128xf32>
    %13 = arith.addf %10, %12 : vector<128x128xf32>
    %14 = arith.addf %6, %13 : vector<128x128xf32>
    %cst = arith.constant 0.000000e+00 : f32
    %15 = vector.broadcast %cst : f32 to vector<128x128xf32>
    %16 = arith.maximumf %14, %15 : vector<128x128xf32>
    %c0_11 = arith.constant 0 : index
    %c0_12 = arith.constant 0 : index
    %17 = vector.load %arg7[%c0_11, %c0_12] : memref<128x128xf32, #tpu.memory_space<vmem>>, vector<128x128xf32>
    tpu.vector_store %arg7[%c0_11, %c0_12], %16 {strides = array<i32>} : memref<128x128xf32, #tpu.memory_space<vmem>>, vector<128x128xf32>,
    return
  }
  func.func @transform_0(%arg0: i32) -> (i32, i32) {
    %c0_i32 = arith.constant 0 : i32
    %c0_i32_0 = arith.constant 0 : i32
    return %arg0, %c0_i32 : i32, i32
  }
  func.func @transform_1(%arg0: i32) -> (i32, i32) {
    %c0_i32 = arith.constant 0 : i32
    %c0_i32_0 = arith.constant 0 : i32
    %c0_i32_1 = arith.constant 0 : i32
    return %c0_i32, %c0_i32_0 : i32, i32
  }
  func.func @transform_2(%arg0: i32) -> (i32, i32) {
    %c0_i32 = arith.constant 0 : i32
    %c0_i32_0 = arith.constant 0 : i32
    %c0_i32_1 = arith.constant 0 : i32
    return %c0_i32, %c0_i32_0 : i32, i32
  }
  func.func @transform_3(%arg0: i32) -> (i32, i32) {
    %c0_i32 = arith.constant 0 : i32
    %c0_i32_0 = arith.constant 0 : i32
    return %arg0, %c0_i32 : i32, i32
  }
  func.func @transform_4(%arg0: i32) -> (i32, i32) {
    %c0_i32 = arith.constant 0 : i32
    %c0_i32_0 = arith.constant 0 : i32
    %c0_i32_1 = arith.constant 0 : i32
    return %c0_i32, %c0_i32_0 : i32, i32
  }
  func.func @transform_5(%arg0: i32) -> (i32, i32) {
    %c0_i32 = arith.constant 0 : i32
    %c0_i32_0 = arith.constant 0 : i32
    %c0_i32_1 = arith.constant 0 : i32
    return %c0_i32, %c0_i32_0 : i32, i32
  }
  func.func @transform_6(%arg0: i32) -> (i32, i32) {
    %c0_i32 = arith.constant 0 : i32
    %c0_i32_0 = arith.constant 0 : i32
    return %arg0, %c0_i32 : i32, i32
  }
}

</mosaic_0001>

<bundles_post_ra>
// kernel: basicblock_forward.6
= control target key start
LH: loop header
LB: loop body
LE: loop exit
PB: predicated region body
PF: predicated region fallthrough
CT: control target
= control target key end

     0   :  { %s254_s0 = inlined_call_operand.vmem [shape: f32[128,128], index: 0, kind: input, shape index: {}]   ;;  %s255_s1 = inlined_call_operand.vmem [shape: f32[1,128], index: 1, kind: input, shape index: {}]   ;;  %s256_s2 = inlined_call_operand.vmem [shape: f32[1,128], index: 2, kind: input, shape index: {}]   ;;  %s257_s3 = inlined_call_operand.vmem [shape: f32[128,128], index: 3, kind: output, shape index: {}]  }
   0x1   :  { %v14_v0 = vld [vmem:[%s254_s0] sm:$0xff]  ;;  %v15_v4 = vld [vmem:[%s254_s0 + $0x8] sm:$0xff]  ;;  %v16_v5 = vld [vmem:[%s254_s0 + $0x10] sm:$0xff] }
   0x2   :  { %v112_v1 = vld [vmem:[%s255_s1] ss:$0 sm:$0xff]  ;;  %v17_v6 = vld [vmem:[%s254_s0 + $0x18] sm:$0xff]  ;;  %v19_v11 = vld [vmem:[%s254_s0 + $0x28] sm:$0xff] }
   0x3   :  { %v143_v2 = vld [vmem:[%s256_s2] ss:$0 sm:$0xff]  ;;  %v37_v3 = vmul.f32 %v112_v1, %v14_v0  ;;  %v38_v7 = vmul.f32 %v112_v1, %v15_v4  ;;  %v39_v8 = vmul.f32 %v112_v1, %v16_v5  ;;  %v40_v9 = vmul.f32 %v112_v1, %v17_v6  ;;  %v20_v12 = vld [vmem:[%s254_s0 + $0x30] sm:$0xff]  ;;  %v21_v17 = vld [vmem:[%s254_s0 + $0x38] sm:$0xff] }
   0x4   :  { %v18_v10 = vld [vmem:[%s254_s0 + $0x20] sm:$0xff]  ;;  %v42_v15 = vmul.f32 %v112_v1, %v19_v11  ;;  %v43_v16 = vmul.f32 %v112_v1, %v20_v12  ;;  %v44_v21 = vmul.f32 %v112_v1, %v21_v17  ;;  %v23_v27 = vld [vmem:[%s254_s0 + $0x48] sm:$0xff]  ;;  %v24_v28 = vld [vmem:[%s254_s0 + $0x50] sm:$0xff] }
   0x5   :  { %v60_v13 = vadd.f32 %v143_v2, %v37_v3  ;;  %v41_v14 = vmul.f32 %v112_v1, %v18_v10  ;;  %v61_v18 = vadd.f32 %v143_v2, %v38_v7  ;;  %v62_v19 = vadd.f32 %v143_v2, %v39_v8  ;;  %v22_v22 = vld [vmem:[%s254_s0 + $0x40] sm:$0xff]  ;;  %v25_v29 = vld [vmem:[%s254_s0 + $0x58] sm:$0xff]  ;;  %v27_v35 = vld [vmem:[%s254_s0 + $0x68] sm:$0xff] }
   0x6   :  { %v63_v20 = vadd.f32 %v143_v2, %v40_v9  ;;  %v65_v25 = vadd.f32 %v143_v2, %v42_v15  ;;  %v66_v26 = vadd.f32 %v143_v2, %v43_v16  ;;  %v67_v33 = vadd.f32 %v143_v2, %v44_v21  ;;  %v26_v34 = vld [vmem:[%s254_s0 + $0x60] sm:$0xff]  ;;  %v28_v36 = vld [vmem:[%s254_s0 + $0x70] sm:$0xff]  ;;  %v29_v41 = vld [vmem:[%s254_s0 + $0x78] sm:$0xff] }
   0x7   :  { %v76_v23 = vmax.f32 %v60_v13, 0.0  ;;  %v64_v24 = vadd.f32 %v143_v2, %v41_v14  ;;  %v77_v30 = vmax.f32 %v61_v18, 0.0  ;;  %v78_v31 = vmax.f32 %v62_v19, 0.0 }
   0x8   :  { %v79_v32 = vmax.f32 %v63_v20, 0.0  ;;  %v81_v38 = vmax.f32 %v65_v25, 0.0  ;;  %v82_v39 = vmax.f32 %v66_v26, 0.0  ;;  %v45_v40 = vmul.f32 %v112_v1, %v22_v22 }
   0x9   :  { %92 = vst [vmem:[%s257_s3] sm:$0xff] %v76_v23  ;;  %v80_v37 = vmax.f32 %v64_v24, 0.0  ;;  %93 = vst [vmem:[%s257_s3 + $0x8] sm:$0xff] %v77_v30  ;;  %v83_v42 = vmax.f32 %v67_v33, 0.0  ;;  %v46_v43 = vmul.f32 %v112_v1, %v23_v27  ;;  %v47_v44 = vmul.f32 %v112_v1, %v24_v28 }
   0xa   :  { %94 = vst [vmem:[%s257_s3 + $0x10] sm:$0xff] %v78_v31  ;;  %95 = vst [vmem:[%s257_s3 + $0x18] sm:$0xff] %v79_v32  ;;  %v48_v45 = vmul.f32 %v112_v1, %v25_v29  ;;  %v68_v46 = vadd.f32 %v143_v2, %v45_v40  ;;  %v49_v47 = vmul.f32 %v112_v1, %v26_v34 }
   0xb   :  { %96 = vst [vmem:[%s257_s3 + $0x20] sm:$0xff] %v80_v37  ;;  %97 = vst [vmem:[%s257_s3 + $0x28] sm:$0xff] %v81_v38  ;;  %v50_v48 = vmul.f32 %v112_v1, %v27_v35  ;;  %v51_v49 = vmul.f32 %v112_v1, %v28_v36  ;;  %v69_v50 = vadd.f32 %v143_v2, %v46_v43 }
   0xc   :  { %98 = vst [vmem:[%s257_s3 + $0x30] sm:$0xff] %v82_v39  ;;  %99 = vst [vmem:[%s257_s3 + $0x38] sm:$0xff] %v83_v42  ;;  %v70_v51 = vadd.f32 %v143_v2, %v47_v44  ;;  %v71_v52 = vadd.f32 %v143_v2, %v48_v45  ;;  %v52_v53 = vmul.f32 %v112_v1, %v29_v41  ;;  %v84_v54 = vmax.f32 %v68_v46, 0.0 }
   0xd   :  { %v72_v55 = vadd.f32 %v143_v2, %v49_v47  ;;  %v73_v56 = vadd.f32 %v143_v2, %v50_v48  ;;  %v74_v57 = vadd.f32 %v143_v2, %v51_v49  ;;  %v85_v58 = vmax.f32 %v69_v50, 0.0 }
   0xe   :  { %v86_v59 = vmax.f32 %v70_v51, 0.0  ;;  %v87_v60 = vmax.f32 %v71_v52, 0.0  ;;  %v75_v61 = vadd.f32 %v143_v2, %v52_v53  ;;  %100 = vst [vmem:[%s257_s3 + $0x40] sm:$0xff] %v84_v54 }
   0xf   :  { %v88_v62 = vmax.f32 %v72_v55, 0.0  ;;  %v89_v63 = vmax.f32 %v73_v56, 0.0  ;;  %v90_v0 = vmax.f32 %v74_v57, 0.0  ;;  %101 = vst [vmem:[%s257_s3 + $0x48] sm:$0xff] %v85_v58 }
  0x10   :  { %102 = vst [vmem:[%s257_s3 + $0x50] sm:$0xff] %v86_v59  ;;  %103 = vst [vmem:[%s257_s3 + $0x58] sm:$0xff] %v87_v60  ;;  %v91_v1 = vmax.f32 %v75_v61, 0.0 }
  0x11   :  { %104 = vst [vmem:[%s257_s3 + $0x60] sm:$0xff] %v88_v62  ;;  %105 = vst [vmem:[%s257_s3 + $0x68] sm:$0xff] %v89_v63 }
  0x12   :  { %106 = vst [vmem:[%s257_s3 + $0x70] sm:$0xff] %v90_v0  ;;  %107 = vst [vmem:[%s257_s3 + $0x78] sm:$0xff] %v91_v1 }

// kernel: basicblock_forward.5
= control target key start
LH: loop header
LB: loop body
LE: loop exit
PB: predicated region body
PF: predicated region fallthrough
CT: control target
= control target key end

     0   :  { %v420_v40 = vmov 0.0   ;;  %s600_s1 = inlined_call_operand.vmem [shape: f32[128,128], index: 1, kind: input, shape index: {}]   ;;  %s601_s0 = inlined_call_operand.vmem [shape: f32[128,128], index: 0, kind: input, shape index: {}]   ;;  %s602_s3 = inlined_call_operand.vmem [shape: f32[8,128], index: 3, kind: output, shape index: {1}]   ;;  %s603_s2 = inlined_call_operand.vmem [shape: f32[128,128], index: 2, kind: output, shape index: {0}]  }
   0x1   :  { %v34_v0 = vld [vmem:[%s600_s1] sm:$0xff]  ;;  %v35_v1 = vld [vmem:[%s600_s1 + $0x8] sm:$0xff]  ;;  %v36_v2 = vld [vmem:[%s600_s1 + $0x10] sm:$0xff]  ;;  %17 = vst [vmem:[%s602_s3] sm:$0xff] %v420_v40 }
   0x2   :  { %v371_v3 = vpack.c.bf16 %v35_v1, %v34_v0  ;;  %v37_v4 = vld [vmem:[%s600_s1 + $0x18] sm:$0xff]  ;;  %v38_v6 = vld [vmem:[%s600_s1 + $0x20] sm:$0xff]  ;;  %v39_v7 = vld [vmem:[%s600_s1 + $0x28] sm:$0xff] }
   0x3   :  { %v375_v5 = vpack.c.bf16 %v37_v4, %v36_v2  ;;  %v379_v8 = vpack.c.bf16 %v39_v7, %v38_v6  ;;  %v18_v9 = vld [vmem:[%s601_s0] sm:$0xff]  ;;  %v40_v10 = vld [vmem:[%s600_s1 + $0x30] sm:$0xff]  ;;  %v41_v11 = vld [vmem:[%s600_s1 + $0x38] sm:$0xff] }
   0x4   :  { %372 = vmatprep.subr.bf16.mxu0 %v371_v3  ;;  %403 = vmatprep.subr.bf16.mxu1 %v371_v3  ;;  %v26_v12 = vld [vmem:[%s601_s0 + $0x40] sm:$0xff]  ;;  %v383_v13 = vpack.c.bf16 %v41_v11, %v40_v10  ;;  %v43_v15 = vld [vmem:[%s600_s1 + $0x48] sm:$0xff]  ;;  %v44_v17 = vld [vmem:[%s600_s1 + $0x50] sm:$0xff] }
   0x5   :  { %374 = vmatpush3.bf16.msra.mxu0 %v371_v3  ;;  %411 = vmatpush3.bf16.msra.mxu1 %v371_v3  ;;  %v42_v14 = vld [vmem:[%s600_s1 + $0x40] sm:$0xff]  ;;  %v45_v18 = vld [vmem:[%s600_s1 + $0x58] sm:$0xff]  ;;  %v47_v21 = vld [vmem:[%s600_s1 + $0x68] sm:$0xff] }
   0x6   :  { %376 = vmatprep.subr.bf16.mxu0 %v375_v5  ;;  %404 = vmatprep.subr.bf16.mxu1 %v375_v5  ;;  %v387_v16 = vpack.c.bf16 %v43_v15, %v42_v14  ;;  %v391_v19 = vpack.c.bf16 %v45_v18, %v44_v17  ;;  %v46_v20 = vld [vmem:[%s600_s1 + $0x60] sm:$0xff]  ;;  %v48_v23 = vld [vmem:[%s600_s1 + $0x70] sm:$0xff]  ;;  %v49_v24 = vld [vmem:[%s600_s1 + $0x78] sm:$0xff] }
   0x7   :  { %347 = vmatprep.mubr.f32.mxu0 %v18_v9  ;;  %359 = vmatprep.mubr.f32.mxu1 %v26_v12  ;;  %v395_v22 = vpack.c.bf16 %v47_v21, %v46_v20  ;;  %v399_v25 = vpack.c.bf16 %v49_v24, %v48_v23  ;;  %v19_v26 = vld [vmem:[%s601_s0 + $0x8] sm:$0xff]  ;;  %v20_v28 = vld [vmem:[%s601_s0 + $0x10] sm:$0xff]  ;;  %v21_v30 = vld [vmem:[%s601_s0 + $0x18] sm:$0xff] }
   0x8   :  { %v27_v27 = vld [vmem:[%s601_s0 + $0x48] sm:$0xff]  ;;  %v28_v29 = vld [vmem:[%s601_s0 + $0x50] sm:$0xff]  ;;  %v29_v31 = vld [vmem:[%s601_s0 + $0x58] sm:$0xff] }
   0x9   :  { %378 = vmatpush3.bf16.msra.mxu0 %v375_v5  ;;  %412 = vmatpush3.bf16.msra.mxu1 %v375_v5  ;;  %v22_v32 = vld [vmem:[%s601_s0 + $0x20] sm:$0xff]  ;;  %v23_v34 = vld [vmem:[%s601_s0 + $0x28] sm:$0xff]  ;;  %v24_v36 = vld [vmem:[%s601_s0 + $0x30] sm:$0xff] }
   0xa   :  { %380 = vmatprep.subr.bf16.mxu0 %v379_v8  ;;  %405 = vmatprep.subr.bf16.mxu1 %v379_v8  ;;  %v30_v33 = vld [vmem:[%s601_s0 + $0x60] sm:$0xff]  ;;  %v31_v35 = vld [vmem:[%s601_s0 + $0x68] sm:$0xff]  ;;  %v32_v37 = vld [vmem:[%s601_s0 + $0x70] sm:$0xff] }
   0xb   :  { %v25_v38 = vld [vmem:[%s601_s0 + $0x38] sm:$0xff] }
   0xc   :  { %v33_v39 = vld [vmem:[%s601_s0 + $0x78] sm:$0xff] }
   0xd   :  { %382 = vmatpush3.bf16.msra.mxu0 %v379_v8  ;;  %413 = vmatpush3.bf16.msra.mxu1 %v379_v8 }
   0xe   :  { %384 = vmatprep.subr.bf16.mxu0 %v383_v13  ;;  %406 = vmatprep.subr.bf16.mxu1 %v383_v13 }
  0x11   :  { %386 = vmatpush3.bf16.msra.mxu0 %v383_v13  ;;  %414 = vmatpush3.bf16.msra.mxu1 %v383_v13 }
  0x12   :  { %388 = vmatprep.subr.bf16.mxu0 %v387_v16  ;;  %407 = vmatprep.subr.bf16.mxu1 %v387_v16 }
  0x15   :  { %390 = vmatpush3.bf16.msra.mxu0 %v387_v16  ;;  %415 = vmatpush3.bf16.msra.mxu1 %v387_v16 }
  0x16   :  { %392 = vmatprep.subr.bf16.mxu0 %v391_v19  ;;  %408 = vmatprep.subr.bf16.mxu1 %v391_v19 }
  0x19   :  { %394 = vmatpush3.bf16.msra.mxu0 %v391_v19  ;;  %416 = vmatpush3.bf16.msra.mxu1 %v391_v19 }
  0x1a   :  { %396 = vmatprep.subr.bf16.mxu0 %v395_v22  ;;  %409 = vmatprep.subr.bf16.mxu1 %v395_v22 }
  0x1d   :  { %398 = vmatpush3.bf16.msra.mxu0 %v395_v22  ;;  %417 = vmatpush3.bf16.msra.mxu1 %v395_v22 }
  0x1e   :  { %400 = vmatprep.subr.bf16.mxu0 %v399_v25  ;;  %410 = vmatprep.subr.bf16.mxu1 %v399_v25 }
  0x21   :  { %402 = vmatpush3.bf16.msra.mxu0 %v399_v25  ;;  %418 = vmatpush3.bf16.msra.mxu1 %v399_v25 }
  0x24   :  { %348 = vmatmul.mubr.f32.vlgmr.msra.gmra.mrb[0].mxu0 %v19_v26  ;;  %360 = vmatmul.mubr.f32.vlgmr.msra.gmra.mrb[0].mxu1 %v27_v27 }
  0x25   :  { %350 = vmatprep.mubr.f32.mxu0 %v20_v28  ;;  %362 = vmatprep.mubr.f32.mxu1 %v28_v29 }
  0x28   :  { %351 = vmatmul.mubr.f32.gmra.mrb[2].mxu0 %v21_v30  ;;  %363 = vmatmul.mubr.f32.gmra.mrb[2].mxu1 %v29_v31 }
  0x29   :  { %353 = vmatprep.mubr.f32.mxu0 %v22_v32  ;;  %365 = vmatprep.mubr.f32.mxu1 %v30_v33 }
  0x2c   :  { %354 = vmatmul.mubr.f32.gmra.mrb[4].mxu0 %v23_v34  ;;  %366 = vmatmul.mubr.f32.gmra.mrb[4].mxu1 %v31_v35 }
  0x2d   :  { %356 = vmatprep.mubr.f32.mxu0 %v24_v36  ;;  %368 = vmatprep.mubr.f32.mxu1 %v32_v37 }
  0x30   :  { %357 = vmatmul.mubr.f32.gmra.mrb[6].mxu0 %v25_v38  ;;  %369 = vmatmul.mubr.f32.gmra.mrb[6].mxu1 %v33_v39 }
  0xf7   :  { %v349_v41 = vpop.f32.mrb[0].mxu0  ;;  %v361_v42 = vpop.f32.mrb[0].mxu1 }
  0xf8   :  { %196 = vst [vmem:[%s603_s2 + $0x8] sm:$0xff] %v349_v41  ;;  %v237_v43 = vmul.f32 %v349_v41, %v349_v41  ;;  %v116_v44 = vpop.f32.mrb[1].mxu0  ;;  %204 = vst [vmem:[%s603_s2 + $0x48] sm:$0xff] %v361_v42  ;;  %v156_v45 = vpop.f32.mrb[1].mxu1  ;;  %v245_v17 = vmul.f32 %v361_v42, %v361_v42 }
  0xf9   :  { %195 = vst [vmem:[%s603_s2] sm:$0xff] %v116_v44  ;;  %v212_v46 = vadd.f32 %v349_v41, %v116_v44  ;;  %v236_v47 = vmul.f32 %v116_v44, %v116_v44  ;;  %203 = vst [vmem:[%s603_s2 + $0x40] sm:$0xff] %v156_v45  ;;  %v244_v14 = vmul.f32 %v156_v45, %v156_v45 }
  0xfb   :  { %v252_v48 = vadd.f32 %v237_v43, %v236_v47  ;;  %v352_v49 = vpop.f32.mrb[2].mxu0  ;;  %v364_v50 = vpop.f32.mrb[2].mxu1 }
  0xfc   :  { %198 = vst [vmem:[%s603_s2 + $0x18] sm:$0xff] %v352_v49  ;;  %v126_v51 = vpop.f32.mrb[3].mxu0  ;;  %206 = vst [vmem:[%s603_s2 + $0x58] sm:$0xff] %v364_v50  ;;  %v166_v52 = vpop.f32.mrb[3].mxu1  ;;  %v239_v55 = vmul.f32 %v352_v49, %v352_v49  ;;  %v247_v23 = vmul.f32 %v364_v50, %v364_v50 }
  0xfd   :  { %197 = vst [vmem:[%s603_s2 + $0x10] sm:$0xff] %v126_v51  ;;  %v213_v53 = vadd.f32 %v212_v46, %v126_v51  ;;  %v238_v54 = vmul.f32 %v126_v51, %v126_v51  ;;  %205 = vst [vmem:[%s603_s2 + $0x50] sm:$0xff] %v166_v52  ;;  %v246_v20 = vmul.f32 %v166_v52, %v166_v52  ;;  %v235_v51 = vld [vmem:[%s602_s3 + $0x1] sm:$0x1] }
  0xff   :  { %v253_v56 = vadd.f32 %v252_v48, %v238_v54  ;;  %v355_v57 = vpop.f32.mrb[4].mxu0  ;;  %v214_v58 = vadd.f32 %v352_v49, %v213_v53  ;;  %v367_v59 = vpop.f32.mrb[4].mxu1  ;;  %v211_v48 = vld [vmem:[%s602_s3] sm:$0x1] }
 0x100   :  { %200 = vst [vmem:[%s603_s2 + $0x28] sm:$0xff] %v355_v57  ;;  %v136_v60 = vpop.f32.mrb[5].mxu0  ;;  %208 = vst [vmem:[%s603_s2 + $0x68] sm:$0xff] %v367_v59  ;;  %v176_v61 = vpop.f32.mrb[5].mxu1  ;;  %v241_v1 = vmul.f32 %v355_v57, %v355_v57  ;;  %v249_v29 = vmul.f32 %v367_v59, %v367_v59 }
 0x101   :  { %199 = vst [vmem:[%s603_s2 + $0x20] sm:$0xff] %v136_v60  ;;  %v215_v62 = vadd.f32 %v214_v58, %v136_v60  ;;  %v240_v63 = vmul.f32 %v136_v60, %v136_v60  ;;  %v254_v0 = vadd.f32 %v253_v56, %v239_v55  ;;  %207 = vst [vmem:[%s603_s2 + $0x60] sm:$0xff] %v176_v61 }
 0x102   :  { %v248_v26 = vmul.f32 %v176_v61, %v176_v61 }
 0x103   :  { %v255_v2 = vadd.f32 %v254_v0, %v240_v63  ;;  %v358_v3 = vpop.f32.mrb[6].mxu0  ;;  %v216_v4 = vadd.f32 %v355_v57, %v215_v62  ;;  %v370_v5 = vpop.f32.mrb[6].mxu1 }
 0x104   :  { %202 = vst [vmem:[%s603_s2 + $0x38] sm:$0xff] %v358_v3  ;;  %v146_v6 = vpop.f32.mrb[7].mxu0  ;;  %210 = vst [vmem:[%s603_s2 + $0x78] sm:$0xff] %v370_v5  ;;  %v186_v7 = vpop.f32.mrb[7].mxu1  ;;  %v243_v11 = vmul.f32 %v358_v3, %v358_v3  ;;  %v251_v35 = vmul.f32 %v370_v5, %v370_v5 }
 0x105   :  { %201 = vst [vmem:[%s603_s2 + $0x30] sm:$0xff] %v146_v6  ;;  %v217_v8 = vadd.f32 %v216_v4, %v146_v6  ;;  %v242_v9 = vmul.f32 %v146_v6, %v146_v6  ;;  %v256_v10 = vadd.f32 %v255_v2, %v241_v1  ;;  %209 = vst [vmem:[%s603_s2 + $0x70] sm:$0xff] %v186_v7 }
 0x106   :  { %v250_v32 = vmul.f32 %v186_v7, %v186_v7 }
 0x107   :  { %v218_v12 = vadd.f32 %v358_v3, %v217_v8  ;;  %v257_v13 = vadd.f32 %v256_v10, %v242_v9 }
 0x109   :  { %v258_v15 = vadd.f32 %v257_v13, %v243_v11  ;;  %v219_v16 = vadd.f32 %v218_v12, %v156_v45 }
 0x10b   :  { %v259_v18 = vadd.f32 %v258_v15, %v244_v14  ;;  %v220_v19 = vadd.f32 %v361_v42, %v219_v16 }
 0x10d   :  { %v221_v21 = vadd.f32 %v220_v19, %v166_v52  ;;  %v260_v22 = vadd.f32 %v259_v18, %v245_v17 }
 0x10f   :  { %v261_v24 = vadd.f32 %v260_v22, %v246_v20  ;;  %v222_v25 = vadd.f32 %v364_v50, %v221_v21 }
 0x111   :  { %v223_v27 = vadd.f32 %v222_v25, %v176_v61  ;;  %v262_v28 = vadd.f32 %v261_v24, %v247_v23 }
 0x113   :  { %v263_v30 = vadd.f32 %v262_v28, %v248_v26  ;;  %v224_v31 = vadd.f32 %v367_v59, %v223_v27 }
 0x115   :  { %v225_v33 = vadd.f32 %v224_v31, %v186_v7  ;;  %v264_v34 = vadd.f32 %v263_v30, %v249_v29 }
 0x117   :  { %v226_v36 = vadd.f32 %v370_v5, %v225_v33  ;;  %v265_v37 = vadd.f32 %v264_v34, %v250_v32 }
 0x119   :  { %v227_v38 = vrot.slane %v226_v36, 4  ;;  %v266_v39 = vadd.f32 %v265_v37, %v251_v35 }
 0x11b   :  { %v228_v40 = vadd.f32 %v227_v38, %v226_v36  ;;  %v267_v41 = vrot.slane %v266_v39, 4 }
 0x11d   :  { %v229_v42 = vrot.slane %v228_v40, 2  ;;  %v268_v43 = vadd.f32 %v267_v41, %v266_v39 }
 0x11f   :  { %v230_v44 = vadd.f32 %v229_v42, %v228_v40  ;;  %v269_v45 = vrot.slane %v268_v43, 2 }
 0x121   :  { %v231_v46 = vrot.slane %v230_v44, 1  ;;  %v270_v47 = vadd.f32 %v269_v45, %v268_v43 }
 0x123   :  { %v232_v49 = vadd.f32 %v231_v46, %v230_v44  ;;  %v271_v50 = vrot.slane %v270_v47, 1 }
 0x125   :  { %v233_v52 = vadd.f32 %v232_v49, %v211_v48  ;;  %v272_v53 = vadd.f32 %v271_v50, %v270_v47 }
 0x127   :  { %234 = vst [vmem:[%s602_s3] sm:$0x1] %v233_v52  ;;  %v273_v54 = vadd.f32 %v272_v53, %v235_v51 }
 0x129   :  { %274 = vst [vmem:[%s602_s3 + $0x1] sm:$0x1] %v273_v54 }

// kernel: basicblock_forward.9
= control target key start
LH: loop header
LB: loop body
LE: loop exit
PB: predicated region body
PF: predicated region fallthrough
CT: control target
= control target key end

     0   :  { %s466_s0 = inlined_call_operand.vmem [shape: f32[128,128], index: 0, kind: input, shape index: {}]   ;;  %s467_s1 = inlined_call_operand.vmem [shape: f32[1,128], index: 1, kind: input, shape index: {}]   ;;  %s468_s2 = inlined_call_operand.vmem [shape: f32[1,128], index: 2, kind: input, shape index: {}]   ;;  %s469_s3 = inlined_call_operand.vmem [shape: f32[128,128], index: 3, kind: input, shape index: {}]   ;;  %s470_s4 = inlined_call_operand.vmem [shape: f32[1,128], index: 4, kind: input, shape index: {}]   ;;  %s471_s5 = inlined_call_operand.vmem [shape: f32[1,128], index: 5, kind: input, shape index: {}]   ;;  %s472_s6 = inlined_call_operand.vmem [shape: f32[128,128], index: 6, kind: output, shape index: {}]  }
   0x1   :  { %v23_v0 = vld [vmem:[%s466_s0] sm:$0xff]  ;;  %v24_v8 = vld [vmem:[%s466_s0 + $0x8] sm:$0xff]  ;;  %v25_v10 = vld [vmem:[%s466_s0 + $0x10] sm:$0xff] }
   0x2   :  { %v244_v1 = vld [vmem:[%s467_s1] ss:$0 sm:$0xff]  ;;  %v86_v9 = vld [vmem:[%s469_s3 + $0x8] sm:$0xff]  ;;  %v87_v15 = vld [vmem:[%s469_s3 + $0x10] sm:$0xff] }
   0x3   :  { %v249_v2 = vld [vmem:[%s468_s2] ss:$0 sm:$0xff]  ;;  %v46_v3 = vmul.f32 %v244_v1, %v23_v0  ;;  %v47_v12 = vmul.f32 %v244_v1, %v24_v8  ;;  %v48_v14 = vmul.f32 %v244_v1, %v25_v10  ;;  %v26_v16 = vld [vmem:[%s466_s0 + $0x18] sm:$0xff]  ;;  %v28_v24 = vld [vmem:[%s466_s0 + $0x28] sm:$0xff] }
   0x4   :  { %v85_v4 = vld [vmem:[%s469_s3] sm:$0xff]  ;;  %v88_v17 = vld [vmem:[%s469_s3 + $0x18] sm:$0xff]  ;;  %v49_v20 = vmul.f32 %v244_v1, %v26_v16  ;;  %v90_v29 = vld [vmem:[%s469_s3 + $0x28] sm:$0xff]  ;;  %v51_v38 = vmul.f32 %v244_v1, %v28_v24 }
   0x5   :  { %v258_v5 = vld [vmem:[%s470_s4] ss:$0 sm:$0xff]  ;;  %v69_v11 = vadd.f32 %v249_v2, %v46_v3  ;;  %v70_v25 = vadd.f32 %v249_v2, %v47_v12  ;;  %v71_v27 = vadd.f32 %v249_v2, %v48_v14  ;;  %v29_v34 = vld [vmem:[%s466_s0 + $0x30] sm:$0xff]  ;;  %v30_v44 = vld [vmem:[%s466_s0 + $0x38] sm:$0xff] }
   0x6   :  { %v263_v6 = vld [vmem:[%s471_s5] ss:$0 sm:$0xff]  ;;  %v108_v7 = vmul.f32 %v258_v5, %v85_v4  ;;  %v109_v13 = vmul.f32 %v258_v5, %v86_v9  ;;  %v110_v19 = vmul.f32 %v258_v5, %v87_v15  ;;  %v111_v21 = vmul.f32 %v258_v5, %v88_v17  ;;  %v91_v39 = vld [vmem:[%s469_s3 + $0x30] sm:$0xff]  ;;  %v92_v45 = vld [vmem:[%s469_s3 + $0x38] sm:$0xff] }
   0x7   :  { %v27_v22 = vld [vmem:[%s466_s0 + $0x20] sm:$0xff]  ;;  %v72_v32 = vadd.f32 %v249_v2, %v49_v20  ;;  %v113_v43 = vmul.f32 %v258_v5, %v90_v29  ;;  %v74_v48 = vadd.f32 %v249_v2, %v51_v38  ;;  %v52_v49 = vmul.f32 %v244_v1, %v29_v34  ;;  %v32_v56 = vld [vmem:[%s466_s0 + $0x48] sm:$0xff]  ;;  %v33_v4 = vld [vmem:[%s466_s0 + $0x50] sm:$0xff] }
   0x8   :  { %v131_v18 = vadd.f32 %v263_v6, %v108_v7  ;;  %v89_v23 = vld [vmem:[%s469_s3 + $0x20] sm:$0xff]  ;;  %v132_v26 = vadd.f32 %v263_v6, %v109_v13  ;;  %v50_v28 = vmul.f32 %v244_v1, %v27_v22  ;;  %v133_v31 = vadd.f32 %v263_v6, %v110_v19  ;;  %v94_v3 = vld [vmem:[%s469_s3 + $0x48] sm:$0xff]  ;;  %v34_v12 = vld [vmem:[%s466_s0 + $0x58] sm:$0xff] }
   0x9   :  { %v134_v33 = vadd.f32 %v263_v6, %v111_v21  ;;  %v112_v37 = vmul.f32 %v258_v5, %v89_v23  ;;  %v31_v50 = vld [vmem:[%s466_s0 + $0x40] sm:$0xff]  ;;  %v136_v54 = vadd.f32 %v263_v6, %v113_v43  ;;  %v114_v55 = vmul.f32 %v258_v5, %v91_v39  ;;  %v96_v17 = vld [vmem:[%s469_s3 + $0x58] sm:$0xff]  ;;  %v37_v34 = vld [vmem:[%s466_s0 + $0x70] sm:$0xff] }
   0xa   :  { %v147_v30 = vadd.f32 %v131_v18, %v69_v11  ;;  %v148_v35 = vadd.f32 %v132_v26, %v70_v25  ;;  %v73_v36 = vadd.f32 %v249_v2, %v50_v28  ;;  %v149_v41 = vadd.f32 %v133_v31, %v71_v27  ;;  %v93_v51 = vld [vmem:[%s469_s3 + $0x40] sm:$0xff]  ;;  %v95_v11 = vld [vmem:[%s469_s3 + $0x50] sm:$0xff]  ;;  %v36_v28 = vld [vmem:[%s466_s0 + $0x68] sm:$0xff] }
   0xb   :  { %v150_v42 = vadd.f32 %v134_v33, %v72_v32  ;;  %v135_v47 = vadd.f32 %v263_v6, %v112_v37  ;;  %v75_v58 = vadd.f32 %v249_v2, %v52_v49  ;;  %v53_v59 = vmul.f32 %v244_v1, %v30_v44  ;;  %v35_v22 = vld [vmem:[%s466_s0 + $0x60] sm:$0xff]  ;;  %v98_v33 = vld [vmem:[%s469_s3 + $0x68] sm:$0xff]  ;;  %v99_v43 = vld [vmem:[%s469_s3 + $0x70] sm:$0xff] }
   0xc   :  { %v163_v40 = vmax.f32 %v147_v30, 0.0  ;;  %v164_v46 = vmax.f32 %v148_v35, 0.0  ;;  %v165_v52 = vmax.f32 %v149_v41, 0.0  ;;  %v115_v60 = vmul.f32 %v258_v5, %v92_v45  ;;  %v97_v27 = vld [vmem:[%s469_s3 + $0x60] sm:$0xff]  ;;  %v100_v49 = vld [vmem:[%s469_s3 + $0x78] sm:$0xff] }
   0xd   :  { %v166_v53 = vmax.f32 %v150_v42, 0.0  ;;  %v151_v57 = vadd.f32 %v135_v47, %v73_v36  ;;  %v152_v61 = vadd.f32 %v136_v54, %v74_v48  ;;  %v137_v62 = vadd.f32 %v263_v6, %v114_v55  ;;  %v38_v48 = vld [vmem:[%s466_s0 + $0x78] sm:$0xff] }
   0xe   :  { %179 = vst [vmem:[%s472_s6] sm:$0xff] %v163_v40  ;;  %180 = vst [vmem:[%s472_s6 + $0x8] sm:$0xff] %v164_v46  ;;  %v54_v63 = vmul.f32 %v244_v1, %v31_v50  ;;  %v116_v0 = vmul.f32 %v258_v5, %v93_v51  ;;  %v76_v8 = vadd.f32 %v249_v2, %v53_v59 }
   0xf   :  { %181 = vst [vmem:[%s472_s6 + $0x10] sm:$0xff] %v165_v52  ;;  %182 = vst [vmem:[%s472_s6 + $0x18] sm:$0xff] %v166_v53  ;;  %v167_v7 = vmax.f32 %v151_v57, 0.0  ;;  %v138_v9 = vadd.f32 %v263_v6, %v115_v60  ;;  %v55_v10 = vmul.f32 %v244_v1, %v32_v56  ;;  %v168_v13 = vmax.f32 %v152_v61, 0.0 }
  0x10   :  { %v153_v14 = vadd.f32 %v137_v62, %v75_v58  ;;  %v77_v15 = vadd.f32 %v249_v2, %v54_v63  ;;  %v139_v16 = vadd.f32 %v263_v6, %v116_v0  ;;  %v117_v20 = vmul.f32 %v258_v5, %v94_v3 }
  0x11   :  { %183 = vst [vmem:[%s472_s6 + $0x20] sm:$0xff] %v167_v7  ;;  %v154_v18 = vadd.f32 %v138_v9, %v76_v8  ;;  %v78_v19 = vadd.f32 %v249_v2, %v55_v10  ;;  %v56_v21 = vmul.f32 %v244_v1, %v33_v4  ;;  %184 = vst [vmem:[%s472_s6 + $0x28] sm:$0xff] %v168_v13 }
  0x12   :  { %v169_v23 = vmax.f32 %v153_v14, 0.0  ;;  %v155_v24 = vadd.f32 %v139_v16, %v77_v15  ;;  %v118_v25 = vmul.f32 %v258_v5, %v95_v11  ;;  %v57_v26 = vmul.f32 %v244_v1, %v34_v12 }
  0x13   :  { %v170_v29 = vmax.f32 %v154_v18, 0.0  ;;  %v140_v30 = vadd.f32 %v263_v6, %v117_v20  ;;  %v79_v31 = vadd.f32 %v249_v2, %v56_v21  ;;  %v119_v32 = vmul.f32 %v258_v5, %v96_v17 }
  0x14   :  { %185 = vst [vmem:[%s472_s6 + $0x30] sm:$0xff] %v169_v23  ;;  %v171_v35 = vmax.f32 %v155_v24, 0.0  ;;  %v141_v36 = vadd.f32 %v263_v6, %v118_v25  ;;  %v80_v37 = vadd.f32 %v249_v2, %v57_v26  ;;  %v58_v38 = vmul.f32 %v244_v1, %v35_v22 }
  0x15   :  { %186 = vst [vmem:[%s472_s6 + $0x38] sm:$0xff] %v170_v29  ;;  %v156_v39 = vadd.f32 %v140_v30, %v78_v19  ;;  %v142_v40 = vadd.f32 %v263_v6, %v119_v32  ;;  %v120_v41 = vmul.f32 %v258_v5, %v97_v27  ;;  %v59_v42 = vmul.f32 %v244_v1, %v36_v28 }
  0x16   :  { %187 = vst [vmem:[%s472_s6 + $0x40] sm:$0xff] %v171_v35  ;;  %v157_v44 = vadd.f32 %v141_v36, %v79_v31  ;;  %v81_v45 = vadd.f32 %v249_v2, %v58_v38  ;;  %v121_v46 = vmul.f32 %v258_v5, %v98_v33  ;;  %v60_v47 = vmul.f32 %v244_v1, %v37_v34 }
  0x17   :  { %v172_v50 = vmax.f32 %v156_v39, 0.0  ;;  %v158_v51 = vadd.f32 %v142_v40, %v80_v37  ;;  %v143_v52 = vadd.f32 %v263_v6, %v120_v41  ;;  %v82_v53 = vadd.f32 %v249_v2, %v59_v42 }
  0x18   :  { %v173_v54 = vmax.f32 %v157_v44, 0.0  ;;  %v144_v55 = vadd.f32 %v263_v6, %v121_v46  ;;  %v83_v56 = vadd.f32 %v249_v2, %v60_v47  ;;  %v122_v57 = vmul.f32 %v258_v5, %v99_v43 }
  0x19   :  { %188 = vst [vmem:[%s472_s6 + $0x48] sm:$0xff] %v172_v50  ;;  %v174_v58 = vmax.f32 %v158_v51, 0.0  ;;  %v159_v59 = vadd.f32 %v143_v52, %v81_v45  ;;  %v61_v60 = vmul.f32 %v244_v1, %v38_v48  ;;  %v123_v61 = vmul.f32 %v258_v5, %v100_v49 }
  0x1a   :  { %189 = vst [vmem:[%s472_s6 + $0x50] sm:$0xff] %v173_v54  ;;  %v160_v62 = vadd.f32 %v144_v55, %v82_v53  ;;  %v145_v63 = vadd.f32 %v263_v6, %v122_v57 }
  0x1b   :  { %190 = vst [vmem:[%s472_s6 + $0x58] sm:$0xff] %v174_v58  ;;  %v175_v0 = vmax.f32 %v159_v59, 0.0  ;;  %v84_v3 = vadd.f32 %v249_v2, %v61_v60  ;;  %v146_v4 = vadd.f32 %v263_v6, %v123_v61 }
  0x1c   :  { %v176_v7 = vmax.f32 %v160_v62, 0.0  ;;  %v161_v1 = vadd.f32 %v145_v63, %v83_v56 }
  0x1d   :  { %191 = vst [vmem:[%s472_s6 + $0x60] sm:$0xff] %v175_v0  ;;  %v162_v5 = vadd.f32 %v146_v4, %v84_v3 }
  0x1e   :  { %192 = vst [vmem:[%s472_s6 + $0x68] sm:$0xff] %v176_v7  ;;  %v177_v8 = vmax.f32 %v161_v1, 0.0 }
  0x1f   :  { %v178_v9 = vmax.f32 %v162_v5, 0.0 }
  0x20   :  { %193 = vst [vmem:[%s472_s6 + $0x70] sm:$0xff] %v177_v8 }
  0x21   :  { %194 = vst [vmem:[%s472_s6 + $0x78] sm:$0xff] %v178_v9 }

// kernel: basicblock_forward.7
= control target key start
LH: loop header
LB: loop body
LE: loop exit
PB: predicated region body
PF: predicated region fallthrough
CT: control target
= control target key end

     0   :  { %s2739_s1 = inlined_call_operand.vmem [shape: f32[1152,128], index: 1, kind: input, shape index: {}]   ;;  %s2740_s0 = inlined_call_operand.vmem [shape: f32[128,1152], index: 0, kind: input, shape index: {}]   ;;  %s2741_s3 = inlined_call_operand.vmem [shape: f32[8,128], index: 3, kind: output, shape index: {1}]   ;;  %s2742_s2 = inlined_call_operand.vmem [shape: f32[128,128], index: 2, kind: output, shape index: {0}]  }
   0x1   :  { %v178_v0 = vld [vmem:[%s2739_s1 + $0x80] sm:$0xff]  ;;  %v179_v1 = vld [vmem:[%s2739_s1 + $0x88] sm:$0xff]  ;;  %v180_v11 = vld [vmem:[%s2739_s1 + $0x90] sm:$0xff] }
   0x2   :  { %v210_v2 = vld [vmem:[%s2739_s1 + $0x180] sm:$0xff]  ;;  %v1527_v3 = vpack.c.bf16 %v179_v1, %v178_v0  ;;  %v211_v4 = vld [vmem:[%s2739_s1 + $0x188] sm:$0xff]  ;;  %v181_v13 = vld [vmem:[%s2739_s1 + $0x98] sm:$0xff] }
   0x3   :  { %v162_v5 = vld [vmem:[%s2739_s1] sm:$0xff]  ;;  %v163_v6 = vld [vmem:[%s2739_s1 + $0x8] sm:$0xff]  ;;  %v1559_v7 = vpack.c.bf16 %v211_v4, %v210_v2  ;;  %v212_v14 = vld [vmem:[%s2739_s1 + $0x190] sm:$0xff]  ;;  %v1531_v16 = vpack.c.bf16 %v181_v13, %v180_v11 }
   0x4   :  { %v1529_v8 = vpack.c.bf16 %v163_v6, %v162_v5  ;;  %v194_v9 = vld [vmem:[%s2739_s1 + $0x100] sm:$0xff]  ;;  %v195_v10 = vld [vmem:[%s2739_s1 + $0x108] sm:$0xff]  ;;  %1528 = vmatprep.subr.bf16.mxu0 %v1527_v3  ;;  %v213_v15 = vld [vmem:[%s2739_s1 + $0x198] sm:$0xff] }
   0x5   :  { %v1561_v12 = vpack.c.bf16 %v195_v10, %v194_v9  ;;  %1560 = vmatprep.subr.bf16.mxu1 %v1559_v7  ;;  %v1563_v17 = vpack.c.bf16 %v213_v15, %v212_v14  ;;  %v164_v18 = vld [vmem:[%s2739_s1 + $0x10] sm:$0xff]  ;;  %v165_v19 = vld [vmem:[%s2739_s1 + $0x18] sm:$0xff]  ;;  %v182_v23 = vld [vmem:[%s2739_s1 + $0xa0] sm:$0xff] }
   0x6   :  { %1530 = vmatpush3.bf16.msra.mxu0 %v1529_v8  ;;  %v196_v20 = vld [vmem:[%s2739_s1 + $0x110] sm:$0xff]  ;;  %v1533_v21 = vpack.c.bf16 %v165_v19, %v164_v18  ;;  %v197_v22 = vld [vmem:[%s2739_s1 + $0x118] sm:$0xff]  ;;  %v183_v24 = vld [vmem:[%s2739_s1 + $0xa8] sm:$0xff] }
   0x7   :  { %1562 = vmatpush3.bf16.msra.mxu1 %v1561_v12  ;;  %1532 = vmatprep.subr.bf16.mxu0 %v1531_v16  ;;  %v1565_v25 = vpack.c.bf16 %v197_v22, %v196_v20  ;;  %v1535_v26 = vpack.c.bf16 %v183_v24, %v182_v23  ;;  %v214_v27 = vld [vmem:[%s2739_s1 + $0x1a0] sm:$0xff]  ;;  %v215_v28 = vld [vmem:[%s2739_s1 + $0x1a8] sm:$0xff]  ;;  %v184_v35 = vld [vmem:[%s2739_s1 + $0xb0] sm:$0xff] }
   0x8   :  { %1564 = vmatprep.subr.bf16.mxu1 %v1563_v17  ;;  %v166_v29 = vld [vmem:[%s2739_s1 + $0x20] sm:$0xff]  ;;  %v1567_v30 = vpack.c.bf16 %v215_v28, %v214_v27  ;;  %v167_v31 = vld [vmem:[%s2739_s1 + $0x28] sm:$0xff]  ;;  %v185_v36 = vld [vmem:[%s2739_s1 + $0xb8] sm:$0xff] }
   0x9   :  { %v198_v32 = vld [vmem:[%s2739_s1 + $0x120] sm:$0xff]  ;;  %v199_v33 = vld [vmem:[%s2739_s1 + $0x128] sm:$0xff]  ;;  %v1537_v34 = vpack.c.bf16 %v167_v31, %v166_v29  ;;  %v216_v37 = vld [vmem:[%s2739_s1 + $0x1b0] sm:$0xff]  ;;  %v1539_v39 = vpack.c.bf16 %v185_v36, %v184_v35 }
   0xa   :  { %1534 = vmatpush3.bf16.msra.mxu0 %v1533_v21  ;;  %v1569_v38 = vpack.c.bf16 %v199_v33, %v198_v32  ;;  %v217_v40 = vld [vmem:[%s2739_s1 + $0x1b8] sm:$0xff]  ;;  %v168_v41 = vld [vmem:[%s2739_s1 + $0x30] sm:$0xff]  ;;  %v186_v46 = vld [vmem:[%s2739_s1 + $0xc0] sm:$0xff] }
   0xb   :  { %1566 = vmatpush3.bf16.msra.mxu1 %v1565_v25  ;;  %1536 = vmatprep.subr.bf16.mxu0 %v1535_v26  ;;  %v169_v42 = vld [vmem:[%s2739_s1 + $0x38] sm:$0xff]  ;;  %v1571_v43 = vpack.c.bf16 %v217_v40, %v216_v37  ;;  %v200_v44 = vld [vmem:[%s2739_s1 + $0x130] sm:$0xff]  ;;  %v187_v47 = vld [vmem:[%s2739_s1 + $0xc8] sm:$0xff] }
   0xc   :  { %1568 = vmatprep.subr.bf16.mxu1 %v1567_v30  ;;  %v201_v45 = vld [vmem:[%s2739_s1 + $0x138] sm:$0xff]  ;;  %v218_v48 = vld [vmem:[%s2739_s1 + $0x1c0] sm:$0xff]  ;;  %v219_v49 = vld [vmem:[%s2739_s1 + $0x1c8] sm:$0xff]  ;;  %v1541_v50 = vpack.c.bf16 %v169_v42, %v168_v41  ;;  %v1543_v52 = vpack.c.bf16 %v187_v47, %v186_v46 }
   0xd   :  { %v1573_v51 = vpack.c.bf16 %v201_v45, %v200_v44  ;;  %v170_v53 = vld [vmem:[%s2739_s1 + $0x40] sm:$0xff]  ;;  %v171_v54 = vld [vmem:[%s2739_s1 + $0x48] sm:$0xff]  ;;  %v1575_v56 = vpack.c.bf16 %v219_v49, %v218_v48  ;;  %v188_v58 = vld [vmem:[%s2739_s1 + $0xd0] sm:$0xff] }
   0xe   :  { %1538 = vmatpush3.bf16.msra.mxu0 %v1537_v34  ;;  %v202_v55 = vld [vmem:[%s2739_s1 + $0x140] sm:$0xff]  ;;  %v203_v57 = vld [vmem:[%s2739_s1 + $0x148] sm:$0xff]  ;;  %v189_v59 = vld [vmem:[%s2739_s1 + $0xd8] sm:$0xff]  ;;  %v1545_v62 = vpack.c.bf16 %v171_v54, %v170_v53 }
   0xf   :  { %1570 = vmatpush3.bf16.msra.mxu1 %v1569_v38  ;;  %1540 = vmatprep.subr.bf16.mxu0 %v1539_v39  ;;  %v220_v60 = vld [vmem:[%s2739_s1 + $0x1d0] sm:$0xff]  ;;  %v221_v61 = vld [vmem:[%s2739_s1 + $0x1d8] sm:$0xff]  ;;  %v1577_v63 = vpack.c.bf16 %v203_v57, %v202_v55  ;;  %v1547_v0 = vpack.c.bf16 %v189_v59, %v188_v58  ;;  %v190_v6 = vld [vmem:[%s2739_s1 + $0xe0] sm:$0xff] }
  0x10   :  { %1572 = vmatprep.subr.bf16.mxu1 %v1571_v43  ;;  %v172_v1 = vld [vmem:[%s2739_s1 + $0x50] sm:$0xff]  ;;  %v173_v2 = vld [vmem:[%s2739_s1 + $0x58] sm:$0xff]  ;;  %v1579_v4 = vpack.c.bf16 %v221_v61, %v220_v60  ;;  %v191_v7 = vld [vmem:[%s2739_s1 + $0xe8] sm:$0xff] }
  0x11   :  { %v204_v3 = vld [vmem:[%s2739_s1 + $0x150] sm:$0xff]  ;;  %v205_v5 = vld [vmem:[%s2739_s1 + $0x158] sm:$0xff]  ;;  %v222_v8 = vld [vmem:[%s2739_s1 + $0x1e0] sm:$0xff]  ;;  %v1549_v10 = vpack.c.bf16 %v173_v2, %v172_v1  ;;  %v1551_v14 = vpack.c.bf16 %v191_v7, %v190_v6 }
  0x12   :  { %1542 = vmatpush3.bf16.msra.mxu0 %v1541_v50  ;;  %v223_v9 = vld [vmem:[%s2739_s1 + $0x1e8] sm:$0xff]  ;;  %v174_v11 = vld [vmem:[%s2739_s1 + $0x60] sm:$0xff]  ;;  %v1581_v13 = vpack.c.bf16 %v205_v5, %v204_v3  ;;  %v21_v17 = vld [vmem:[%s2740_s0 + $0x18] sm:$0xff] }
  0x13   :  { %1574 = vmatpush3.bf16.msra.mxu1 %v1573_v51  ;;  %1544 = vmatprep.subr.bf16.mxu0 %v1543_v52  ;;  %v175_v12 = vld [vmem:[%s2739_s1 + $0x68] sm:$0xff]  ;;  %v206_v15 = vld [vmem:[%s2739_s1 + $0x160] sm:$0xff]  ;;  %v1583_v18 = vpack.c.bf16 %v223_v9, %v222_v8  ;;  %v192_v20 = vld [vmem:[%s2739_s1 + $0xf0] sm:$0xff] }
  0x14   :  { %1576 = vmatprep.subr.bf16.mxu1 %v1575_v56  ;;  %v19_v16 = vld [vmem:[%s2740_s0 + $0x8] sm:$0xff]  ;;  %v193_v21 = vld [vmem:[%s2739_s1 + $0xf8] sm:$0xff]  ;;  %v224_v22 = vld [vmem:[%s2739_s1 + $0x1f0] sm:$0xff]  ;;  %515 = vmatprep.mubr.f32.mxu1 %v21_v17  ;;  %v1553_v24 = vpack.c.bf16 %v175_v12, %v174_v11 }
  0x15   :  { %v207_v19 = vld [vmem:[%s2739_s1 + $0x168] sm:$0xff]  ;;  %370 = vmatprep.mubr.f32.mxu0 %v19_v16  ;;  %v225_v23 = vld [vmem:[%s2739_s1 + $0x1f8] sm:$0xff]  ;;  %v1555_v26 = vpack.c.bf16 %v193_v21, %v192_v20  ;;  %v176_v27 = vld [vmem:[%s2739_s1 + $0x70] sm:$0xff] }
  0x16   :  { %1546 = vmatpush3.bf16.msra.mxu0 %v1545_v62  ;;  %v1585_v25 = vpack.c.bf16 %v207_v19, %v206_v15  ;;  %v177_v28 = vld [vmem:[%s2739_s1 + $0x78] sm:$0xff]  ;;  %v208_v29 = vld [vmem:[%s2739_s1 + $0x170] sm:$0xff]  ;;  %v1587_v30 = vpack.c.bf16 %v225_v23, %v224_v22  ;;  %v242_v32 = vld [vmem:[%s2739_s1 + $0x280] sm:$0xff] }
  0x17   :  { %1578 = vmatpush3.bf16.msra.mxu1 %v1577_v63  ;;  %1548 = vmatprep.subr.bf16.mxu0 %v1547_v0  ;;  %v209_v31 = vld [vmem:[%s2739_s1 + $0x178] sm:$0xff]  ;;  %v243_v33 = vld [vmem:[%s2739_s1 + $0x288] sm:$0xff]  ;;  %v1557_v34 = vpack.c.bf16 %v177_v28, %v176_v27  ;;  %v226_v37 = vld [vmem:[%s2739_s1 + $0x200] sm:$0xff] }
  0x18   :  { %1580 = vmatprep.subr.bf16.mxu1 %v1579_v4  ;;  %v1589_v35 = vpack.c.bf16 %v209_v31, %v208_v29  ;;  %v1591_v36 = vpack.c.bf16 %v243_v33, %v242_v32  ;;  %v227_v38 = vld [vmem:[%s2739_s1 + $0x208] sm:$0xff]  ;;  %v244_v39 = vld [vmem:[%s2739_s1 + $0x290] sm:$0xff]  ;;  %v245_v40 = vld [vmem:[%s2739_s1 + $0x298] sm:$0xff] }
  0x19   :  { %v274_v41 = vld [vmem:[%s2739_s1 + $0x380] sm:$0xff]  ;;  %v275_v42 = vld [vmem:[%s2739_s1 + $0x388] sm:$0xff]  ;;  %v1593_v44 = vpack.c.bf16 %v227_v38, %v226_v37  ;;  %v20_v47 = vld [vmem:[%s2740_s0 + $0x10] sm:$0xff]  ;;  %v1595_v51 = vpack.c.bf16 %v245_v40, %v244_v39 }
  0x1a   :  { %1550 = vmatpush3.bf16.msra.mxu0 %v1549_v10  ;;  %v18_v43 = vld [vmem:[%s2740_s0] sm:$0xff]  ;;  %v1623_v45 = vpack.c.bf16 %v275_v42, %v274_v41  ;;  %v28_v48 = vld [vmem:[%s2740_s0 + $0x50] sm:$0xff]  ;;  %v259_v49 = vld [vmem:[%s2739_s1 + $0x308] sm:$0xff] }
  0x1b   :  { %1582 = vmatpush3.bf16.msra.mxu1 %v1581_v13  ;;  %1552 = vmatprep.subr.bf16.mxu0 %v1551_v14  ;;  %v258_v46 = vld [vmem:[%s2739_s1 + $0x300] sm:$0xff]  ;;  %v228_v52 = vld [vmem:[%s2739_s1 + $0x210] sm:$0xff]  ;;  %v229_v53 = vld [vmem:[%s2739_s1 + $0x218] sm:$0xff] }
  0x1c   :  { %1584 = vmatprep.subr.bf16.mxu1 %v1583_v18  ;;  %v30_v50 = vld [vmem:[%s2740_s0 + $0x60] sm:$0xff]  ;;  %v1625_v54 = vpack.c.bf16 %v259_v49, %v258_v46  ;;  %v27_v55 = vld [vmem:[%s2740_s0 + $0x48] sm:$0xff]  ;;  %v29_v58 = vld [vmem:[%s2740_s0 + $0x58] sm:$0xff]  ;;  %v1597_v62 = vpack.c.bf16 %v229_v53, %v228_v52 }
  0x1d   :  { %v246_v56 = vld [vmem:[%s2739_s1 + $0x2a0] sm:$0xff]  ;;  %v247_v57 = vld [vmem:[%s2739_s1 + $0x2a8] sm:$0xff]  ;;  %v37_v59 = vld [vmem:[%s2740_s0 + $0x98] sm:$0xff] }
  0x1e   :  { %1554 = vmatpush3.bf16.msra.mxu0 %v1553_v24  ;;  %v276_v60 = vld [vmem:[%s2739_s1 + $0x390] sm:$0xff]  ;;  %v39_v61 = vld [vmem:[%s2740_s0 + $0xa8] sm:$0xff]  ;;  %v230_v63 = vld [vmem:[%s2739_s1 + $0x220] sm:$0xff]  ;;  %v1599_v1 = vpack.c.bf16 %v247_v57, %v246_v56 }
  0x1f   :  { %1586 = vmatpush3.bf16.msra.mxu1 %v1585_v25  ;;  %1556 = vmatprep.subr.bf16.mxu0 %v1555_v26  ;;  %v277_v0 = vld [vmem:[%s2739_s1 + $0x398] sm:$0xff]  ;;  %v231_v2 = vld [vmem:[%s2739_s1 + $0x228] sm:$0xff]  ;;  %v260_v4 = vld [vmem:[%s2739_s1 + $0x310] sm:$0xff] }
  0x20   :  { %1588 = vmatprep.subr.bf16.mxu1 %v1587_v30  ;;  %v1627_v3 = vpack.c.bf16 %v277_v0, %v276_v60  ;;  %v261_v5 = vld [vmem:[%s2739_s1 + $0x318] sm:$0xff]  ;;  %v248_v6 = vld [vmem:[%s2739_s1 + $0x2b0] sm:$0xff]  ;;  %v38_v10 = vld [vmem:[%s2740_s0 + $0xa0] sm:$0xff]  ;;  %v1601_v13 = vpack.c.bf16 %v231_v2, %v230_v63 }
  0x21   :  { %v249_v7 = vld [vmem:[%s2739_s1 + $0x2b8] sm:$0xff]  ;;  %v1629_v8 = vpack.c.bf16 %v261_v5, %v260_v4  ;;  %v36_v9 = vld [vmem:[%s2740_s0 + $0x90] sm:$0xff]  ;;  %v46_v11 = vld [vmem:[%s2740_s0 + $0xe0] sm:$0xff] }
  0x22   :  { %1558 = vmatpush3.bf16.msra.mxu0 %v1557_v34  ;;  %v48_v12 = vld [vmem:[%s2740_s0 + $0xf0] sm:$0xff]  ;;  %v233_v15 = vld [vmem:[%s2739_s1 + $0x238] sm:$0xff]  ;;  %v1603_v16 = vpack.c.bf16 %v249_v7, %v248_v6  ;;  %v250_v17 = vld [vmem:[%s2739_s1 + $0x2c0] sm:$0xff] }
  0x23   :  { %1590 = vmatpush3.bf16.msra.mxu1 %v1589_v35  ;;  %1592 = vmatprep.subr.bf16.mxu0 %v1591_v36  ;;  %v232_v14 = vld [vmem:[%s2739_s1 + $0x230] sm:$0xff]  ;;  %v278_v18 = vld [vmem:[%s2739_s1 + $0x3a0] sm:$0xff]  ;;  %v279_v19 = vld [vmem:[%s2739_s1 + $0x3a8] sm:$0xff] }
  0x24   :  { %1624 = vmatprep.subr.bf16.mxu1 %v1623_v45  ;;  %v251_v20 = vld [vmem:[%s2739_s1 + $0x2c8] sm:$0xff]  ;;  %v1631_v21 = vpack.c.bf16 %v279_v19, %v278_v18  ;;  %v262_v22 = vld [vmem:[%s2739_s1 + $0x320] sm:$0xff]  ;;  %v45_v24 = vld [vmem:[%s2740_s0 + $0xd8] sm:$0xff]  ;;  %v1605_v29 = vpack.c.bf16 %v233_v15, %v232_v14 }
  0x25   :  { %371 = vmatmul.mubr.f32.vlgmr.msra.gmra.mrb[0].mxu0 %v18_v43  ;;  %v263_v23 = vld [vmem:[%s2739_s1 + $0x328] sm:$0xff]  ;;  %v57_v28 = vld [vmem:[%s2740_s0 + $0x138] sm:$0xff]  ;;  %v1607_v30 = vpack.c.bf16 %v251_v20, %v250_v17  ;;  %v234_v31 = vld [vmem:[%s2739_s1 + $0x240] sm:$0xff] }
  0x26   :  { %516 = vmatmul.mubr.f32.vlgmr.msra.gmra.mrb[0].mxu1 %v20_v47  ;;  %1594 = vmatpush3.bf16.msra.mxu0 %v1593_v44  ;;  %v1633_v25 = vpack.c.bf16 %v263_v23, %v262_v22  ;;  %v47_v26 = vld [vmem:[%s2740_s0 + $0xe8] sm:$0xff]  ;;  %v252_v33 = vld [vmem:[%s2739_s1 + $0x2d0] sm:$0xff]  ;;  %v253_v34 = vld [vmem:[%s2739_s1 + $0x2d8] sm:$0xff] }
  0x27   :  { %375 = vmatprep.mubr.f32.mxu0 %v28_v48  ;;  %520 = vmatprep.mubr.f32.mxu1 %v30_v50  ;;  %v55_v27 = vld [vmem:[%s2740_s0 + $0x128] sm:$0xff]  ;;  %v280_v35 = vld [vmem:[%s2739_s1 + $0x3b0] sm:$0xff]  ;;  %v281_v36 = vld [vmem:[%s2739_s1 + $0x3b8] sm:$0xff]  ;;  %v1611_v45 = vpack.c.bf16 %v253_v34, %v252_v33 }
  0x28   :  { %1596 = vmatprep.subr.bf16.mxu0 %v1595_v51  ;;  %1626 = vmatpush3.bf16.msra.mxu1 %v1625_v54  ;;  %v235_v32 = vld [vmem:[%s2739_s1 + $0x248] sm:$0xff]  ;;  %v54_v37 = vld [vmem:[%s2740_s0 + $0x120] sm:$0xff]  ;;  %v1635_v38 = vpack.c.bf16 %v281_v36, %v280_v35  ;;  %v264_v39 = vld [vmem:[%s2739_s1 + $0x330] sm:$0xff] }
  0x29   :  { %376 = vmatmul.mubr.f32.gmra.mrb[2].mxu0 %v27_v55  ;;  %1628 = vmatprep.subr.bf16.mxu1 %v1627_v3  ;;  %v56_v40 = vld [vmem:[%s2740_s0 + $0x130] sm:$0xff]  ;;  %v1609_v42 = vpack.c.bf16 %v235_v32, %v234_v31  ;;  %v265_v43 = vld [vmem:[%s2739_s1 + $0x338] sm:$0xff]  ;;  %v66_v44 = vld [vmem:[%s2740_s0 + $0x180] sm:$0xff] }
  0x2a   :  { %521 = vmatmul.mubr.f32.gmra.mrb[2].mxu1 %v29_v58  ;;  %380 = vmatprep.mubr.f32.mxu0 %v37_v59  ;;  %v64_v41 = vld [vmem:[%s2740_s0 + $0x170] sm:$0xff]  ;;  %v237_v47 = vld [vmem:[%s2739_s1 + $0x258] sm:$0xff]  ;;  %v1637_v48 = vpack.c.bf16 %v265_v43, %v264_v39  ;;  %v63_v49 = vld [vmem:[%s2740_s0 + $0x168] sm:$0xff] }
  0x2b   :  { %525 = vmatprep.mubr.f32.mxu1 %v39_v61  ;;  %1598 = vmatpush3.bf16.msra.mxu0 %v1597_v62  ;;  %v236_v46 = vld [vmem:[%s2739_s1 + $0x250] sm:$0xff]  ;;  %v65_v50 = vld [vmem:[%s2740_s0 + $0x178] sm:$0xff]  ;;  %v254_v52 = vld [vmem:[%s2739_s1 + $0x2e0] sm:$0xff] }
  0x2c   :  { %1600 = vmatprep.subr.bf16.mxu0 %v1599_v1  ;;  %1630 = vmatpush3.bf16.msra.mxu1 %v1629_v8  ;;  %v73_v51 = vld [vmem:[%s2740_s0 + $0x1b8] sm:$0xff]  ;;  %v255_v53 = vld [vmem:[%s2739_s1 + $0x2e8] sm:$0xff]  ;;  %v282_v54 = vld [vmem:[%s2739_s1 + $0x3c0] sm:$0xff]  ;;  %v1613_v56 = vpack.c.bf16 %v237_v47, %v236_v46 }
  0x2d   :  { %381 = vmatmul.mubr.f32.gmra.mrb[4].mxu0 %v36_v9  ;;  %1632 = vmatprep.subr.bf16.mxu1 %v1631_v21  ;;  %v75_v55 = vld [vmem:[%s2740_s0 + $0x1c8] sm:$0xff]  ;;  %v238_v58 = vld [vmem:[%s2739_s1 + $0x260] sm:$0xff]  ;;  %v1615_v59 = vpack.c.bf16 %v255_v53, %v254_v52  ;;  %v72_v0 = vld [vmem:[%s2740_s0 + $0x1b0] sm:$0xff] }
  0x2e   :  { %526 = vmatmul.mubr.f32.gmra.mrb[4].mxu1 %v38_v10  ;;  %385 = vmatprep.mubr.f32.mxu0 %v46_v11  ;;  %v283_v57 = vld [vmem:[%s2739_s1 + $0x3c8] sm:$0xff]  ;;  %v266_v62 = vld [vmem:[%s2739_s1 + $0x340] sm:$0xff]  ;;  %v284_v2 = vld [vmem:[%s2739_s1 + $0x3d0] sm:$0xff] }
  0x2f   :  { %530 = vmatprep.mubr.f32.mxu1 %v48_v12  ;;  %1602 = vmatpush3.bf16.msra.mxu0 %v1601_v13  ;;  %v1639_v60 = vpack.c.bf16 %v283_v57, %v282_v54  ;;  %v239_v61 = vld [vmem:[%s2739_s1 + $0x268] sm:$0xff]  ;;  %v285_v3 = vld [vmem:[%s2739_s1 + $0x3d8] sm:$0xff]  ;;  %v268_v4 = vld [vmem:[%s2739_s1 + $0x350] sm:$0xff] }
  0x30   :  { %1604 = vmatprep.subr.bf16.mxu0 %v1603_v16  ;;  %1634 = vmatpush3.bf16.msra.mxu1 %v1633_v25  ;;  %v267_v63 = vld [vmem:[%s2739_s1 + $0x348] sm:$0xff]  ;;  %v74_v5 = vld [vmem:[%s2740_s0 + $0x1c0] sm:$0xff]  ;;  %v1617_v7 = vpack.c.bf16 %v239_v61, %v238_v58  ;;  %v269_v8 = vld [vmem:[%s2739_s1 + $0x358] sm:$0xff]  ;;  %v1643_v11 = vpack.c.bf16 %v285_v3, %v284_v2 }
  0x31   :  { %386 = vmatmul.mubr.f32.gmra.mrb[6].mxu0 %v45_v24  ;;  %1636 = vmatprep.subr.bf16.mxu1 %v1635_v38  ;;  %v1641_v1 = vpack.c.bf16 %v267_v63, %v266_v62  ;;  %v82_v6 = vld [vmem:[%s2740_s0 + $0x200] sm:$0xff]  ;;  %v84_v9 = vld [vmem:[%s2740_s0 + $0x210] sm:$0xff]  ;;  %v81_v10 = vld [vmem:[%s2740_s0 + $0x1f8] sm:$0xff]  ;;  %v1645_v13 = vpack.c.bf16 %v269_v8, %v268_v4 }
  0x32   :  { %531 = vmatmul.mubr.f32.gmra.mrb[6].mxu1 %v47_v26  ;;  %390 = vmatprep.mubr.f32.mxu0 %v55_v27  ;;  %v256_v12 = vld [vmem:[%s2739_s1 + $0x2f0] sm:$0xff]  ;;  %v257_v14 = vld [vmem:[%s2739_s1 + $0x2f8] sm:$0xff]  ;;  %v286_v15 = vld [vmem:[%s2739_s1 + $0x3e0] sm:$0xff] }
  0x33   :  { %535 = vmatprep.mubr.f32.mxu1 %v57_v28  ;;  %1606 = vmatpush3.bf16.msra.mxu0 %v1605_v29  ;;  %v287_v16 = vld [vmem:[%s2739_s1 + $0x3e8] sm:$0xff]  ;;  %v1619_v17 = vpack.c.bf16 %v257_v14, %v256_v12  ;;  %v240_v18 = vld [vmem:[%s2739_s1 + $0x270] sm:$0xff]  ;;  %v241_v19 = vld [vmem:[%s2739_s1 + $0x278] sm:$0xff] }
  0x34   :  { %1608 = vmatprep.subr.bf16.mxu0 %v1607_v30  ;;  %1638 = vmatpush3.bf16.msra.mxu1 %v1637_v48  ;;  %v270_v20 = vld [vmem:[%s2739_s1 + $0x360] sm:$0xff]  ;;  %v83_v21 = vld [vmem:[%s2740_s0 + $0x208] sm:$0xff]  ;;  %v1647_v23 = vpack.c.bf16 %v287_v16, %v286_v15  ;;  %v93_v25 = vld [vmem:[%s2740_s0 + $0x258] sm:$0xff]  ;;  %v1621_v26 = vpack.c.bf16 %v241_v19, %v240_v18 }
  0x35   :  { %391 = vmatmul.mubr.f32.gmra.mrb[8].mxu0 %v54_v37  ;;  %1640 = vmatprep.subr.bf16.mxu1 %v1639_v60  ;;  %v91_v22 = vld [vmem:[%s2740_s0 + $0x248] sm:$0xff]  ;;  %v288_v27 = vld [vmem:[%s2739_s1 + $0x3f0] sm:$0xff]  ;;  %v90_v28 = vld [vmem:[%s2740_s0 + $0x240] sm:$0xff] }
  0x36   :  { %536 = vmatmul.mubr.f32.gmra.mrb[8].mxu1 %v56_v40  ;;  %395 = vmatprep.mubr.f32.mxu0 %v64_v41  ;;  %v271_v24 = vld [vmem:[%s2739_s1 + $0x368] sm:$0xff]  ;;  %v289_v30 = vld [vmem:[%s2739_s1 + $0x3f8] sm:$0xff]  ;;  %v92_v31 = vld [vmem:[%s2740_s0 + $0x250] sm:$0xff] }
  0x37   :  { %540 = vmatprep.mubr.f32.mxu1 %v66_v44  ;;  %1610 = vmatpush3.bf16.msra.mxu0 %v1609_v42  ;;  %v1649_v29 = vpack.c.bf16 %v271_v24, %v270_v20  ;;  %v272_v32 = vld [vmem:[%s2739_s1 + $0x370] sm:$0xff]  ;;  %v273_v33 = vld [vmem:[%s2739_s1 + $0x378] sm:$0xff]  ;;  %v1651_v35 = vpack.c.bf16 %v289_v30, %v288_v27  ;;  %v290_v36 = vld [vmem:[%s2739_s1 + $0x400] sm:$0xff] }
  0x38   :  { %1612 = vmatprep.subr.bf16.mxu0 %v1611_v45  ;;  %1642 = vmatpush3.bf16.msra.mxu1 %v1641_v1  ;;  %v100_v34 = vld [vmem:[%s2740_s0 + $0x290] sm:$0xff]  ;;  %v291_v37 = vld [vmem:[%s2739_s1 + $0x408] sm:$0xff]  ;;  %v102_v38 = vld [vmem:[%s2740_s0 + $0x2a0] sm:$0xff]  ;;  %v1653_v40 = vpack.c.bf16 %v273_v33, %v272_v32 }
  0x39   :  { %396 = vmatmul.mubr.f32.gmra.mrb[10].mxu0 %v63_v49  ;;  %1644 = vmatprep.subr.bf16.mxu1 %v1643_v11  ;;  %v2229_v39 = vpack.c.bf16 %v291_v37, %v290_v36  ;;  %v99_v41 = vld [vmem:[%s2740_s0 + $0x288] sm:$0xff]  ;;  %v101_v42 = vld [vmem:[%s2740_s0 + $0x298] sm:$0xff]  ;;  %v108_v45 = vld [vmem:[%s2740_s0 + $0x2d0] sm:$0xff] }
  0x3a   :  { %541 = vmatmul.mubr.f32.gmra.mrb[10].mxu1 %v65_v50  ;;  %400 = vmatprep.mubr.f32.mxu0 %v73_v51  ;;  %v109_v43 = vld [vmem:[%s2740_s0 + $0x2d8] sm:$0xff]  ;;  %v111_v44 = vld [vmem:[%s2740_s0 + $0x2e8] sm:$0xff]  ;;  %v110_v46 = vld [vmem:[%s2740_s0 + $0x2e0] sm:$0xff] }
  0x3b   :  { %545 = vmatprep.mubr.f32.mxu1 %v75_v55  ;;  %1614 = vmatpush3.bf16.msra.mxu0 %v1613_v56  ;;  %v118_v47 = vld [vmem:[%s2740_s0 + $0x320] sm:$0xff]  ;;  %v120_v48 = vld [vmem:[%s2740_s0 + $0x330] sm:$0xff]  ;;  %v117_v49 = vld [vmem:[%s2740_s0 + $0x318] sm:$0xff] }
  0x3c   :  { %1616 = vmatprep.subr.bf16.mxu0 %v1615_v59  ;;  %1646 = vmatpush3.bf16.msra.mxu1 %v1645_v13  ;;  %v119_v50 = vld [vmem:[%s2740_s0 + $0x328] sm:$0xff]  ;;  %v129_v52 = vld [vmem:[%s2740_s0 + $0x378] sm:$0xff]  ;;  %v126_v53 = vld [vmem:[%s2740_s0 + $0x360] sm:$0xff] }
  0x3d   :  { %401 = vmatmul.mubr.f32.gmra.mrb[12].mxu0 %v72_v0  ;;  %1648 = vmatprep.subr.bf16.mxu1 %v1647_v23  ;;  %v127_v51 = vld [vmem:[%s2740_s0 + $0x368] sm:$0xff]  ;;  %v128_v54 = vld [vmem:[%s2740_s0 + $0x370] sm:$0xff]  ;;  %v138_v56 = vld [vmem:[%s2740_s0 + $0x3c0] sm:$0xff] }
  0x3e   :  { %546 = vmatmul.mubr.f32.gmra.mrb[12].mxu1 %v74_v5  ;;  %405 = vmatprep.mubr.f32.mxu0 %v82_v6  ;;  %v136_v55 = vld [vmem:[%s2740_s0 + $0x3b0] sm:$0xff]  ;;  %v135_v57 = vld [vmem:[%s2740_s0 + $0x3a8] sm:$0xff]  ;;  %v137_v58 = vld [vmem:[%s2740_s0 + $0x3b8] sm:$0xff] }
  0x3f   :  { %550 = vmatprep.mubr.f32.mxu1 %v84_v9  ;;  %1618 = vmatpush3.bf16.msra.mxu0 %v1617_v7  ;;  %v145_v59 = vld [vmem:[%s2740_s0 + $0x3f8] sm:$0xff]  ;;  %v147_v60 = vld [vmem:[%s2740_s0 + $0x408] sm:$0xff]  ;;  %v144_v61 = vld [vmem:[%s2740_s0 + $0x3f0] sm:$0xff] }
  0x40   :  { %1620 = vmatprep.subr.bf16.mxu0 %v1619_v17  ;;  %1650 = vmatpush3.bf16.msra.mxu1 %v1649_v29  ;;  %v146_v62 = vld [vmem:[%s2740_s0 + $0x400] sm:$0xff]  ;;  %v156_v0 = vld [vmem:[%s2740_s0 + $0x450] sm:$0xff]  ;;  %v153_v1 = vld [vmem:[%s2740_s0 + $0x438] sm:$0xff] }
  0x41   :  { %406 = vmatmul.mubr.f32.gmra.mrb[14].mxu0 %v81_v10  ;;  %1652 = vmatprep.subr.bf16.mxu1 %v1651_v35  ;;  %v154_v63 = vld [vmem:[%s2740_s0 + $0x440] sm:$0xff]  ;;  %v155_v2 = vld [vmem:[%s2740_s0 + $0x448] sm:$0xff]  ;;  %v25_v4 = vld [vmem:[%s2740_s0 + $0x38] sm:$0xff] }
  0x42   :  { %551 = vmatmul.mubr.f32.gmra.mrb[14].mxu1 %v83_v21  ;;  %410 = vmatprep.mubr.f32.mxu0 %v91_v22  ;;  %v23_v3 = vld [vmem:[%s2740_s0 + $0x28] sm:$0xff]  ;;  %v292_v5 = vld [vmem:[%s2739_s1 + $0x410] sm:$0xff]  ;;  %v293_v6 = vld [vmem:[%s2739_s1 + $0x418] sm:$0xff] }
  0x43   :  { %555 = vmatprep.mubr.f32.mxu1 %v93_v25  ;;  %1622 = vmatpush3.bf16.msra.mxu0 %v1621_v26  ;;  %v22_v7 = vld [vmem:[%s2740_s0 + $0x20] sm:$0xff]  ;;  %v24_v8 = vld [vmem:[%s2740_s0 + $0x30] sm:$0xff]  ;;  %v1659_v11 = vpack.c.bf16 %v293_v6, %v292_v5  ;;  %v295_v13 = vld [vmem:[%s2739_s1 + $0x428] sm:$0xff] }
  0x44   :  { %1656 = vmatprep.subr.bf16.mxu0 %v2229_v39  ;;  %1654 = vmatpush3.bf16.msra.mxu1 %v1653_v40  ;;  %v32_v9 = vld [vmem:[%s2740_s0 + $0x70] sm:$0xff]  ;;  %v34_v10 = vld [vmem:[%s2740_s0 + $0x80] sm:$0xff]  ;;  %v31_v14 = vld [vmem:[%s2740_s0 + $0x68] sm:$0xff] }
  0x45   :  { %411 = vmatmul.mubr.f32.gmra.mrb[16].mxu0 %v90_v28  ;;  %1687 = vmatprep.subr.bf16.mxu1 %v2229_v39  ;;  %v294_v12 = vld [vmem:[%s2739_s1 + $0x420] sm:$0xff]  ;;  %v33_v15 = vld [vmem:[%s2740_s0 + $0x78] sm:$0xff]  ;;  %v43_v17 = vld [vmem:[%s2740_s0 + $0xc8] sm:$0xff] }
  0x46   :  { %556 = vmatmul.mubr.f32.gmra.mrb[16].mxu1 %v92_v31  ;;  %415 = vmatprep.mubr.f32.mxu0 %v100_v34  ;;  %v41_v16 = vld [vmem:[%s2740_s0 + $0xb8] sm:$0xff]  ;;  %v1663_v18 = vpack.c.bf16 %v295_v13, %v294_v12  ;;  %v296_v19 = vld [vmem:[%s2739_s1 + $0x430] sm:$0xff]  ;;  %v42_v22 = vld [vmem:[%s2740_s0 + $0xc0] sm:$0xff] }
  0x47   :  { %560 = vmatprep.mubr.f32.mxu1 %v102_v38  ;;  %v297_v20 = vld [vmem:[%s2739_s1 + $0x438] sm:$0xff]  ;;  %v40_v21 = vld [vmem:[%s2740_s0 + $0xb0] sm:$0xff]  ;;  %v50_v23 = vld [vmem:[%s2740_s0 + $0x100] sm:$0xff] }
  0x48   :  { %v52_v24 = vld [vmem:[%s2740_s0 + $0x110] sm:$0xff]  ;;  %v1667_v25 = vpack.c.bf16 %v297_v20, %v296_v19  ;;  %v298_v26 = vld [vmem:[%s2739_s1 + $0x440] sm:$0xff]  ;;  %v299_v27 = vld [vmem:[%s2739_s1 + $0x448] sm:$0xff] }
  0x49   :  { %416 = vmatmul.mubr.f32.gmra.mrb[18].mxu0 %v99_v41  ;;  %v49_v28 = vld [vmem:[%s2740_s0 + $0xf8] sm:$0xff]  ;;  %v51_v29 = vld [vmem:[%s2740_s0 + $0x108] sm:$0xff]  ;;  %v1671_v32 = vpack.c.bf16 %v299_v27, %v298_v26  ;;  %v300_v33 = vld [vmem:[%s2739_s1 + $0x450] sm:$0xff] }
  0x4a   :  { %561 = vmatmul.mubr.f32.gmra.mrb[18].mxu1 %v101_v42  ;;  %420 = vmatprep.mubr.f32.mxu0 %v109_v43  ;;  %v59_v30 = vld [vmem:[%s2740_s0 + $0x148] sm:$0xff]  ;;  %v61_v31 = vld [vmem:[%s2740_s0 + $0x158] sm:$0xff]  ;;  %v58_v35 = vld [vmem:[%s2740_s0 + $0x140] sm:$0xff] }
  0x4b   :  { %565 = vmatprep.mubr.f32.mxu1 %v111_v44  ;;  %v301_v34 = vld [vmem:[%s2739_s1 + $0x458] sm:$0xff]  ;;  %v60_v36 = vld [vmem:[%s2740_s0 + $0x150] sm:$0xff]  ;;  %v70_v38 = vld [vmem:[%s2740_s0 + $0x1a0] sm:$0xff] }
  0x4c   :  { %v68_v37 = vld [vmem:[%s2740_s0 + $0x190] sm:$0xff]  ;;  %v302_v40 = vld [vmem:[%s2739_s1 + $0x460] sm:$0xff]  ;;  %v303_v41 = vld [vmem:[%s2739_s1 + $0x468] sm:$0xff] }
  0x4d   :  { %421 = vmatmul.mubr.f32.gmra.mrb[20].mxu0 %v108_v45  ;;  %v67_v42 = vld [vmem:[%s2740_s0 + $0x188] sm:$0xff]  ;;  %v69_v43 = vld [vmem:[%s2740_s0 + $0x198] sm:$0xff]  ;;  %v124_v5 = vld [vmem:[%s2740_s0 + $0x350] sm:$0xff] }
  0x4e   :  { %566 = vmatmul.mubr.f32.gmra.mrb[20].mxu1 %v110_v46  ;;  %425 = vmatprep.mubr.f32.mxu0 %v118_v47  ;;  %v77_v44 = vld [vmem:[%s2740_s0 + $0x1d8] sm:$0xff]  ;;  %v79_v45 = vld [vmem:[%s2740_s0 + $0x1e8] sm:$0xff]  ;;  %v1679_v46 = vpack.c.bf16 %v303_v41, %v302_v40  ;;  %v304_v47 = vld [vmem:[%s2739_s1 + $0x470] sm:$0xff] }
  0x4f   :  { %570 = vmatprep.mubr.f32.mxu1 %v120_v48  ;;  %v305_v48 = vld [vmem:[%s2739_s1 + $0x478] sm:$0xff]  ;;  %v140_v12 = vld [vmem:[%s2740_s0 + $0x3d0] sm:$0xff]  ;;  %v142_v13 = vld [vmem:[%s2740_s0 + $0x3e0] sm:$0xff] }
  0x50   :  { %v121_v6 = vld [vmem:[%s2740_s0 + $0x338] sm:$0xff]  ;;  %v150_v19 = vld [vmem:[%s2740_s0 + $0x420] sm:$0xff]  ;;  %v35_v26 = vld [vmem:[%s2740_s0 + $0x88] sm:$0xff] }
  0x51   :  { %426 = vmatmul.mubr.f32.gmra.mrb[22].mxu0 %v117_v49  ;;  %v76_v49 = vld [vmem:[%s2740_s0 + $0x1d0] sm:$0xff]  ;;  %v158_v20 = vld [vmem:[%s2740_s0 + $0x460] sm:$0xff]  ;;  %v107_v27 = vld [vmem:[%s2740_s0 + $0x2c8] sm:$0xff] }
  0x52   :  { %571 = vmatmul.mubr.f32.gmra.mrb[22].mxu1 %v119_v50  ;;  %430 = vmatprep.mubr.f32.mxu0 %v127_v51  ;;  %v78_v50 = vld [vmem:[%s2740_s0 + $0x1e0] sm:$0xff] }
  0x53   :  { %575 = vmatprep.mubr.f32.mxu1 %v129_v52  ;;  %v86_v51 = vld [vmem:[%s2740_s0 + $0x220] sm:$0xff]  ;;  %v88_v52 = vld [vmem:[%s2740_s0 + $0x230] sm:$0xff] }
  0x55   :  { %431 = vmatmul.mubr.f32.gmra.mrb[24].mxu0 %v126_v53  ;;  %v1683_v53 = vpack.c.bf16 %v305_v48, %v304_v47 }
  0x56   :  { %576 = vmatmul.mubr.f32.gmra.mrb[24].mxu1 %v128_v54  ;;  %435 = vmatprep.mubr.f32.mxu0 %v136_v55  ;;  %v85_v54 = vld [vmem:[%s2740_s0 + $0x218] sm:$0xff]  ;;  %v87_v55 = vld [vmem:[%s2740_s0 + $0x228] sm:$0xff] }
  0x57   :  { %580 = vmatprep.mubr.f32.mxu1 %v138_v56  ;;  %v95_v56 = vld [vmem:[%s2740_s0 + $0x268] sm:$0xff] }
  0x59   :  { %436 = vmatmul.mubr.f32.gmra.mrb[26].mxu0 %v135_v57  ;;  %v97_v57 = vld [vmem:[%s2740_s0 + $0x278] sm:$0xff] }
  0x5a   :  { %581 = vmatmul.mubr.f32.gmra.mrb[26].mxu1 %v137_v58  ;;  %440 = vmatprep.mubr.f32.mxu0 %v145_v59  ;;  %v94_v58 = vld [vmem:[%s2740_s0 + $0x260] sm:$0xff]  ;;  %v96_v59 = vld [vmem:[%s2740_s0 + $0x270] sm:$0xff] }
  0x5b   :  { %585 = vmatprep.mubr.f32.mxu1 %v147_v60  ;;  %v104_v60 = vld [vmem:[%s2740_s0 + $0x2b0] sm:$0xff] }
  0x5d   :  { %441 = vmatmul.mubr.f32.gmra.mrb[28].mxu0 %v144_v61  ;;  %v106_v61 = vld [vmem:[%s2740_s0 + $0x2c0] sm:$0xff] }
  0x5e   :  { %586 = vmatmul.mubr.f32.gmra.mrb[28].mxu1 %v146_v62  ;;  %445 = vmatprep.mubr.f32.mxu0 %v154_v63  ;;  %v103_v62 = vld [vmem:[%s2740_s0 + $0x2a8] sm:$0xff]  ;;  %v105_v63 = vld [vmem:[%s2740_s0 + $0x2b8] sm:$0xff] }
  0x5f   :  { %590 = vmatprep.mubr.f32.mxu1 %v156_v0  ;;  %v113_v0 = vld [vmem:[%s2740_s0 + $0x2f8] sm:$0xff] }
  0x61   :  { %446 = vmatmul.mubr.f32.gmra.mrb[30].mxu0 %v153_v1  ;;  %v115_v1 = vld [vmem:[%s2740_s0 + $0x308] sm:$0xff] }
  0x62   :  { %591 = vmatmul.mubr.f32.gmra.mrb[30].mxu1 %v155_v2  ;;  %660 = vmatprep.mubr.f32.mxu0 %v23_v3  ;;  %v112_v2 = vld [vmem:[%s2740_s0 + $0x2f0] sm:$0xff]  ;;  %v114_v3 = vld [vmem:[%s2740_s0 + $0x300] sm:$0xff] }
  0x63   :  { %805 = vmatprep.mubr.f32.mxu1 %v25_v4  ;;  %v122_v4 = vld [vmem:[%s2740_s0 + $0x340] sm:$0xff] }
  0x65   :  { %661 = vmatmul.mubr.f32.vlgmr.msra.gmra.mrb[32].mxu0 %v22_v7  ;;  %v123_v7 = vld [vmem:[%s2740_s0 + $0x348] sm:$0xff] }
  0x66   :  { %806 = vmatmul.mubr.f32.vlgmr.msra.gmra.mrb[32].mxu1 %v24_v8  ;;  %1658 = vmatpush3.bf16.msra.mxu0 %v2229_v39  ;;  %v131_v8 = vld [vmem:[%s2740_s0 + $0x388] sm:$0xff] }
  0x67   :  { %665 = vmatprep.mubr.f32.mxu0 %v32_v9  ;;  %810 = vmatprep.mubr.f32.mxu1 %v34_v10  ;;  %v133_v9 = vld [vmem:[%s2740_s0 + $0x398] sm:$0xff]  ;;  %v130_v10 = vld [vmem:[%s2740_s0 + $0x380] sm:$0xff] }
  0x68   :  { %1660 = vmatprep.subr.bf16.mxu0 %v1659_v11  ;;  %1695 = vmatpush3.bf16.msra.mxu1 %v2229_v39  ;;  %v1675_v39 = vpack.c.bf16 %v301_v34, %v300_v33  ;;  %v134_v33 = vld [vmem:[%s2740_s0 + $0x3a0] sm:$0xff]  ;;  %v71_v34 = vld [vmem:[%s2740_s0 + $0x1a8] sm:$0xff] }
  0x69   :  { %666 = vmatmul.mubr.f32.gmra.mrb[34].mxu0 %v31_v14  ;;  %1688 = vmatprep.subr.bf16.mxu1 %v1659_v11  ;;  %v139_v14 = vld [vmem:[%s2740_s0 + $0x3c8] sm:$0xff] }
  0x6a   :  { %811 = vmatmul.mubr.f32.gmra.mrb[34].mxu1 %v33_v15  ;;  %670 = vmatprep.mubr.f32.mxu0 %v41_v16  ;;  %v141_v15 = vld [vmem:[%s2740_s0 + $0x3d8] sm:$0xff] }
  0x6b   :  { %815 = vmatprep.mubr.f32.mxu1 %v43_v17  ;;  %1662 = vmatpush3.bf16.msra.mxu0 %v1659_v11  ;;  %v149_v16 = vld [vmem:[%s2740_s0 + $0x418] sm:$0xff]  ;;  %v151_v17 = vld [vmem:[%s2740_s0 + $0x428] sm:$0xff] }
  0x6c   :  { %1664 = vmatprep.subr.bf16.mxu0 %v1663_v18  ;;  %1696 = vmatpush3.bf16.msra.mxu1 %v1659_v11  ;;  %v132_v11 = vld [vmem:[%s2740_s0 + $0x390] sm:$0xff] }
  0x6d   :  { %671 = vmatmul.mubr.f32.gmra.mrb[36].mxu0 %v40_v21  ;;  %1689 = vmatprep.subr.bf16.mxu1 %v1663_v18  ;;  %v160_v21 = vld [vmem:[%s2740_s0 + $0x470] sm:$0xff] }
  0x6e   :  { %816 = vmatmul.mubr.f32.gmra.mrb[36].mxu1 %v42_v22  ;;  %675 = vmatprep.mubr.f32.mxu0 %v50_v23  ;;  %v157_v22 = vld [vmem:[%s2740_s0 + $0x458] sm:$0xff]  ;;  %v159_v23 = vld [vmem:[%s2740_s0 + $0x468] sm:$0xff] }
  0x6f   :  { %820 = vmatprep.mubr.f32.mxu1 %v52_v24  ;;  %1666 = vmatpush3.bf16.msra.mxu0 %v1663_v18  ;;  %v26_v24 = vld [vmem:[%s2740_s0 + $0x40] sm:$0xff] }
  0x70   :  { %1668 = vmatprep.subr.bf16.mxu0 %v1667_v25  ;;  %1697 = vmatpush3.bf16.msra.mxu1 %v1663_v18  ;;  %v148_v18 = vld [vmem:[%s2740_s0 + $0x410] sm:$0xff] }
  0x71   :  { %676 = vmatmul.mubr.f32.gmra.mrb[38].mxu0 %v49_v28  ;;  %1690 = vmatprep.subr.bf16.mxu1 %v1667_v25  ;;  %v44_v28 = vld [vmem:[%s2740_s0 + $0xd0] sm:$0xff] }
  0x72   :  { %821 = vmatmul.mubr.f32.gmra.mrb[38].mxu1 %v51_v29  ;;  %680 = vmatprep.mubr.f32.mxu0 %v59_v30  ;;  %v116_v29 = vld [vmem:[%s2740_s0 + $0x310] sm:$0xff]  ;;  %v53_v30 = vld [vmem:[%s2740_s0 + $0x118] sm:$0xff] }
  0x73   :  { %825 = vmatprep.mubr.f32.mxu1 %v61_v31  ;;  %1670 = vmatpush3.bf16.msra.mxu0 %v1667_v25  ;;  %v125_v31 = vld [vmem:[%s2740_s0 + $0x358] sm:$0xff] }
  0x74   :  { %1672 = vmatprep.subr.bf16.mxu0 %v1671_v32  ;;  %1698 = vmatpush3.bf16.msra.mxu1 %v1667_v25  ;;  %v98_v25 = vld [vmem:[%s2740_s0 + $0x280] sm:$0xff] }
  0x75   :  { %681 = vmatmul.mubr.f32.gmra.mrb[40].mxu0 %v58_v35  ;;  %1691 = vmatprep.subr.bf16.mxu1 %v1671_v32  ;;  %v143_v35 = vld [vmem:[%s2740_s0 + $0x3e8] sm:$0xff] }
  0x76   :  { %826 = vmatmul.mubr.f32.gmra.mrb[40].mxu1 %v60_v36  ;;  %685 = vmatprep.mubr.f32.mxu0 %v68_v37  ;;  %v80_v36 = vld [vmem:[%s2740_s0 + $0x1f0] sm:$0xff] }
  0x77   :  { %830 = vmatprep.mubr.f32.mxu1 %v70_v38  ;;  %1674 = vmatpush3.bf16.msra.mxu0 %v1671_v32  ;;  %v152_v37 = vld [vmem:[%s2740_s0 + $0x430] sm:$0xff]  ;;  %v89_v38 = vld [vmem:[%s2740_s0 + $0x238] sm:$0xff] }
  0x78   :  { %1676 = vmatprep.subr.bf16.mxu0 %v1675_v39  ;;  %1699 = vmatpush3.bf16.msra.mxu1 %v1671_v32  ;;  %v62_v32 = vld [vmem:[%s2740_s0 + $0x160] sm:$0xff] }
  0x79   :  { %686 = vmatmul.mubr.f32.gmra.mrb[42].mxu0 %v67_v42  ;;  %1692 = vmatprep.subr.bf16.mxu1 %v1675_v39 }
  0x7a   :  { %831 = vmatmul.mubr.f32.gmra.mrb[42].mxu1 %v69_v43  ;;  %690 = vmatprep.mubr.f32.mxu0 %v77_v44 }
  0x7b   :  { %835 = vmatprep.mubr.f32.mxu1 %v79_v45  ;;  %1678 = vmatpush3.bf16.msra.mxu0 %v1675_v39 }
  0x7c   :  { %1680 = vmatprep.subr.bf16.mxu0 %v1679_v46  ;;  %1700 = vmatpush3.bf16.msra.mxu1 %v1675_v39  ;;  %v161_v39 = vld [vmem:[%s2740_s0 + $0x478] sm:$0xff] }
  0x7d   :  { %691 = vmatmul.mubr.f32.gmra.mrb[44].mxu0 %v76_v49  ;;  %1693 = vmatprep.subr.bf16.mxu1 %v1679_v46 }
  0x7e   :  { %836 = vmatmul.mubr.f32.gmra.mrb[44].mxu1 %v78_v50  ;;  %695 = vmatprep.mubr.f32.mxu0 %v86_v51 }
  0x7f   :  { %840 = vmatprep.mubr.f32.mxu1 %v88_v52  ;;  %1682 = vmatpush3.bf16.msra.mxu0 %v1679_v46 }
  0x80   :  { %1684 = vmatprep.subr.bf16.mxu0 %v1683_v53  ;;  %1701 = vmatpush3.bf16.msra.mxu1 %v1679_v46 }
  0x81   :  { %696 = vmatmul.mubr.f32.gmra.mrb[46].mxu0 %v85_v54  ;;  %1694 = vmatprep.subr.bf16.mxu1 %v1683_v53 }
  0x82   :  { %841 = vmatmul.mubr.f32.gmra.mrb[46].mxu1 %v87_v55  ;;  %700 = vmatprep.mubr.f32.mxu0 %v95_v56 }
  0x83   :  { %845 = vmatprep.mubr.f32.mxu1 %v97_v57  ;;  %1686 = vmatpush3.bf16.msra.mxu0 %v1683_v53 }
  0x84   :  { %1702 = vmatpush3.bf16.msra.mxu1 %v1683_v53 }
  0x85   :  { %701 = vmatmul.mubr.f32.gmra.mrb[48].mxu0 %v94_v58 }
  0x86   :  { %846 = vmatmul.mubr.f32.gmra.mrb[48].mxu1 %v96_v59  ;;  %705 = vmatprep.mubr.f32.mxu0 %v104_v60 }
  0x87   :  { %850 = vmatprep.mubr.f32.mxu1 %v106_v61 }
  0x89   :  { %706 = vmatmul.mubr.f32.gmra.mrb[50].mxu0 %v103_v62 }
  0x8a   :  { %851 = vmatmul.mubr.f32.gmra.mrb[50].mxu1 %v105_v63  ;;  %710 = vmatprep.mubr.f32.mxu0 %v113_v0 }
  0x8b   :  { %855 = vmatprep.mubr.f32.mxu1 %v115_v1 }
  0x8d   :  { %711 = vmatmul.mubr.f32.gmra.mrb[52].mxu0 %v112_v2 }
  0x8e   :  { %856 = vmatmul.mubr.f32.gmra.mrb[52].mxu1 %v114_v3  ;;  %715 = vmatprep.mubr.f32.mxu0 %v122_v4 }
  0x8f   :  { %860 = vmatprep.mubr.f32.mxu1 %v124_v5 }
  0x91   :  { %716 = vmatmul.mubr.f32.gmra.mrb[54].mxu0 %v121_v6 }
  0x92   :  { %861 = vmatmul.mubr.f32.gmra.mrb[54].mxu1 %v123_v7  ;;  %720 = vmatprep.mubr.f32.mxu0 %v131_v8 }
  0x93   :  { %865 = vmatprep.mubr.f32.mxu1 %v133_v9 }
  0x95   :  { %721 = vmatmul.mubr.f32.gmra.mrb[56].mxu0 %v130_v10 }
  0x96   :  { %866 = vmatmul.mubr.f32.gmra.mrb[56].mxu1 %v132_v11  ;;  %725 = vmatprep.mubr.f32.mxu0 %v140_v12 }
  0x97   :  { %870 = vmatprep.mubr.f32.mxu1 %v142_v13 }
  0x99   :  { %726 = vmatmul.mubr.f32.gmra.mrb[58].mxu0 %v139_v14 }
  0x9a   :  { %871 = vmatmul.mubr.f32.gmra.mrb[58].mxu1 %v141_v15  ;;  %730 = vmatprep.mubr.f32.mxu0 %v149_v16 }
  0x9b   :  { %875 = vmatprep.mubr.f32.mxu1 %v151_v17 }
  0x9d   :  { %731 = vmatmul.mubr.f32.gmra.mrb[60].mxu0 %v148_v18 }
  0x9e   :  { %876 = vmatmul.mubr.f32.gmra.mrb[60].mxu1 %v150_v19  ;;  %735 = vmatprep.mubr.f32.mxu0 %v158_v20 }
  0x9f   :  { %880 = vmatprep.mubr.f32.mxu1 %v160_v21  ;;  %v1704_v21 = vmov 0.0  }
  0xa0   :  { %17 = vst [vmem:[%s2741_s3] sm:$0xff] %v1704_v21 }
  0xa1   :  { %736 = vmatmul.mubr.f32.gmra.mrb[62].mxu0 %v157_v22 }
  0xa2   :  { %881 = vmatmul.mubr.f32.gmra.mrb[62].mxu1 %v159_v23  ;;  %1503 = vmatprep.mubr.f32.mxu0 %v26_v24 }
  0xa3   :  { %1515 = vmatprep.mubr.f32.mxu1 %v98_v25 }
  0xa5   :  { %1504 = vmatmul.mubr.f32.vlgmr.msra.gmra.mrb[64].mxu0 %v35_v26 }
  0xa6   :  { %1516 = vmatmul.mubr.f32.vlgmr.msra.gmra.mrb[64].mxu1 %v107_v27  ;;  %1506 = vmatprep.mubr.f32.mxu0 %v44_v28 }
  0xa7   :  { %1518 = vmatprep.mubr.f32.mxu1 %v116_v29 }
  0xa9   :  { %1507 = vmatmul.mubr.f32.gmra.mrb[66].mxu0 %v53_v30 }
  0xaa   :  { %1519 = vmatmul.mubr.f32.gmra.mrb[66].mxu1 %v125_v31  ;;  %1509 = vmatprep.mubr.f32.mxu0 %v62_v32 }
  0xab   :  { %1521 = vmatprep.mubr.f32.mxu1 %v134_v33 }
  0xad   :  { %1510 = vmatmul.mubr.f32.gmra.mrb[68].mxu0 %v71_v34 }
  0xae   :  { %1522 = vmatmul.mubr.f32.gmra.mrb[68].mxu1 %v143_v35  ;;  %1512 = vmatprep.mubr.f32.mxu0 %v80_v36 }
  0xaf   :  { %1524 = vmatprep.mubr.f32.mxu1 %v152_v37 }
  0xb1   :  { %1513 = vmatmul.mubr.f32.gmra.mrb[70].mxu0 %v89_v38 }
  0xb2   :  { %1525 = vmatmul.mubr.f32.gmra.mrb[70].mxu1 %v161_v39 }
  0xf8   :  { %v1151_v40 = vpop.f32.mrb[0].mxu0 }
  0xf9   :  { %v1231_v41 = vpop.f32.mrb[0].mxu1  ;;  %v1152_v42 = vpop.f32.mrb[1].mxu0 }
  0xfa   :  { %v1153_v43 = vadd.f32 %v1152_v42, %v1151_v40  ;;  %v1232_v44 = vpop.f32.mrb[1].mxu1 }
  0xfb   :  { %v1233_v45 = vadd.f32 %v1232_v44, %v1231_v41 }
  0xfc   :  { %v1154_v46 = vpop.f32.mrb[2].mxu0 }
  0xfd   :  { %v2595_v47 = vadd.f32 %v1233_v45, %v1153_v43  ;;  %v1234_v48 = vpop.f32.mrb[2].mxu1  ;;  %v1155_v49 = vpop.f32.mrb[3].mxu0 }
  0xfe   :  { %v1156_v50 = vadd.f32 %v1155_v49, %v1154_v46  ;;  %v1235_v51 = vpop.f32.mrb[3].mxu1 }
  0xff   :  { %v1236_v52 = vadd.f32 %v1235_v51, %v1234_v48 }
 0x100   :  { %v1157_v53 = vpop.f32.mrb[4].mxu0 }
 0x101   :  { %v2597_v54 = vadd.f32 %v1236_v52, %v1156_v50  ;;  %v1237_v55 = vpop.f32.mrb[4].mxu1  ;;  %v1158_v56 = vpop.f32.mrb[5].mxu0 }
 0x102   :  { %v1159_v57 = vadd.f32 %v1158_v56, %v1157_v53  ;;  %v1238_v58 = vpop.f32.mrb[5].mxu1 }
 0x103   :  { %v1239_v59 = vadd.f32 %v1238_v58, %v1237_v55 }
 0x104   :  { %v1160_v60 = vpop.f32.mrb[6].mxu0 }
 0x105   :  { %v2599_v61 = vadd.f32 %v1239_v59, %v1159_v57  ;;  %v1240_v62 = vpop.f32.mrb[6].mxu1  ;;  %v1161_v63 = vpop.f32.mrb[7].mxu0 }
 0x106   :  { %v1162_v0 = vadd.f32 %v1161_v63, %v1160_v60  ;;  %v1241_v1 = vpop.f32.mrb[7].mxu1 }
 0x107   :  { %v1242_v2 = vadd.f32 %v1241_v1, %v1240_v62 }
 0x108   :  { %v1163_v3 = vpop.f32.mrb[8].mxu0 }
 0x109   :  { %v2601_v4 = vadd.f32 %v1242_v2, %v1162_v0  ;;  %v1243_v5 = vpop.f32.mrb[8].mxu1  ;;  %v1164_v6 = vpop.f32.mrb[9].mxu0 }
 0x10a   :  { %v1165_v7 = vadd.f32 %v1164_v6, %v1163_v3  ;;  %v1244_v8 = vpop.f32.mrb[9].mxu1 }
 0x10b   :  { %v1245_v9 = vadd.f32 %v1244_v8, %v1243_v5 }
 0x10c   :  { %v1166_v10 = vpop.f32.mrb[10].mxu0 }
 0x10d   :  { %v2603_v11 = vadd.f32 %v1245_v9, %v1165_v7  ;;  %v1246_v12 = vpop.f32.mrb[10].mxu1  ;;  %v1167_v13 = vpop.f32.mrb[11].mxu0 }
 0x10e   :  { %v1168_v14 = vadd.f32 %v1167_v13, %v1166_v10  ;;  %v1247_v15 = vpop.f32.mrb[11].mxu1 }
 0x10f   :  { %v1248_v16 = vadd.f32 %v1247_v15, %v1246_v12 }
 0x110   :  { %v1169_v17 = vpop.f32.mrb[12].mxu0 }
 0x111   :  { %v2605_v18 = vadd.f32 %v1248_v16, %v1168_v14  ;;  %v1249_v19 = vpop.f32.mrb[12].mxu1  ;;  %v1170_v20 = vpop.f32.mrb[13].mxu0 }
 0x112   :  { %v1171_v22 = vadd.f32 %v1170_v20, %v1169_v17  ;;  %v1250_v23 = vpop.f32.mrb[13].mxu1 }
 0x113   :  { %v1251_v24 = vadd.f32 %v1250_v23, %v1249_v19 }
 0x114   :  { %v1172_v25 = vpop.f32.mrb[14].mxu0 }
 0x115   :  { %v2610_v26 = vadd.f32 %v1251_v24, %v1171_v22  ;;  %v1252_v27 = vpop.f32.mrb[14].mxu1  ;;  %v1173_v28 = vpop.f32.mrb[15].mxu0 }
 0x116   :  { %v1174_v29 = vadd.f32 %v1173_v28, %v1172_v25  ;;  %v1253_v30 = vpop.f32.mrb[15].mxu1 }
 0x117   :  { %v1254_v31 = vadd.f32 %v1253_v30, %v1252_v27 }
 0x118   :  { %v1175_v32 = vpop.f32.mrb[16].mxu0 }
 0x119   :  { %v2612_v33 = vadd.f32 %v1254_v31, %v1174_v29  ;;  %v1255_v34 = vpop.f32.mrb[16].mxu1  ;;  %v1176_v35 = vpop.f32.mrb[17].mxu0 }
 0x11a   :  { %v1177_v36 = vadd.f32 %v1176_v35, %v1175_v32  ;;  %v1256_v37 = vpop.f32.mrb[17].mxu1 }
 0x11b   :  { %v1257_v38 = vadd.f32 %v1256_v37, %v1255_v34 }
 0x11c   :  { %v1178_v39 = vpop.f32.mrb[18].mxu0 }
 0x11d   :  { %v2614_v40 = vadd.f32 %v1257_v38, %v1177_v36  ;;  %v1258_v41 = vpop.f32.mrb[18].mxu1  ;;  %v1179_v42 = vpop.f32.mrb[19].mxu0 }
 0x11e   :  { %v1180_v43 = vadd.f32 %v1179_v42, %v1178_v39  ;;  %v1259_v44 = vpop.f32.mrb[19].mxu1 }
 0x11f   :  { %v1260_v45 = vadd.f32 %v1259_v44, %v1258_v41 }
 0x120   :  { %v1181_v46 = vpop.f32.mrb[20].mxu0 }
 0x121   :  { %v2616_v48 = vadd.f32 %v1260_v45, %v1180_v43  ;;  %v1261_v49 = vpop.f32.mrb[20].mxu1  ;;  %v1182_v50 = vpop.f32.mrb[21].mxu0 }
 0x122   :  { %v1183_v51 = vadd.f32 %v1182_v50, %v1181_v46  ;;  %v1262_v52 = vpop.f32.mrb[21].mxu1 }
 0x123   :  { %v1263_v53 = vadd.f32 %v1262_v52, %v1261_v49 }
 0x124   :  { %v1184_v55 = vpop.f32.mrb[22].mxu0 }
 0x125   :  { %v2618_v56 = vadd.f32 %v1263_v53, %v1183_v51  ;;  %v1264_v57 = vpop.f32.mrb[22].mxu1  ;;  %v1185_v58 = vpop.f32.mrb[23].mxu0 }
 0x126   :  { %v1186_v59 = vadd.f32 %v1185_v58, %v1184_v55  ;;  %v1265_v60 = vpop.f32.mrb[23].mxu1 }
 0x127   :  { %v1266_v62 = vadd.f32 %v1265_v60, %v1264_v57 }
 0x128   :  { %v1187_v63 = vpop.f32.mrb[24].mxu0 }
 0x129   :  { %v2620_v0 = vadd.f32 %v1266_v62, %v1186_v59  ;;  %v1267_v1 = vpop.f32.mrb[24].mxu1  ;;  %v1188_v2 = vpop.f32.mrb[25].mxu0 }
 0x12a   :  { %v1189_v3 = vadd.f32 %v1188_v2, %v1187_v63  ;;  %v1268_v5 = vpop.f32.mrb[25].mxu1 }
 0x12b   :  { %v1269_v6 = vadd.f32 %v1268_v5, %v1267_v1 }
 0x12c   :  { %v1190_v7 = vpop.f32.mrb[26].mxu0 }
 0x12d   :  { %v2622_v8 = vadd.f32 %v1269_v6, %v1189_v3  ;;  %v1270_v9 = vpop.f32.mrb[26].mxu1  ;;  %v1191_v10 = vpop.f32.mrb[27].mxu0 }
 0x12e   :  { %v1192_v12 = vadd.f32 %v1191_v10, %v1190_v7  ;;  %v1271_v13 = vpop.f32.mrb[27].mxu1 }
 0x12f   :  { %v1272_v14 = vadd.f32 %v1271_v13, %v1270_v9 }
 0x130   :  { %v1193_v15 = vpop.f32.mrb[28].mxu0 }
 0x131   :  { %v2624_v16 = vadd.f32 %v1272_v14, %v1192_v12  ;;  %v1273_v17 = vpop.f32.mrb[28].mxu1  ;;  %v1194_v19 = vpop.f32.mrb[29].mxu0 }
 0x132   :  { %v1195_v20 = vadd.f32 %v1194_v19, %v1193_v15  ;;  %v1274_v21 = vpop.f32.mrb[29].mxu1 }
 0x133   :  { %v1275_v22 = vadd.f32 %v1274_v21, %v1273_v17 }
 0x134   :  { %v1196_v23 = vpop.f32.mrb[30].mxu0 }
 0x135   :  { %v2626_v24 = vadd.f32 %v1275_v22, %v1195_v20  ;;  %v1276_v25 = vpop.f32.mrb[30].mxu1  ;;  %v1197_v27 = vpop.f32.mrb[31].mxu0 }
 0x136   :  { %v1198_v28 = vadd.f32 %v1197_v27, %v1196_v23  ;;  %v1277_v29 = vpop.f32.mrb[31].mxu1 }
 0x137   :  { %v1278_v30 = vadd.f32 %v1277_v29, %v1276_v25 }
 0x138   :  { %v1311_v31 = vpop.f32.mrb[32].mxu0 }
 0x139   :  { %v2628_v32 = vadd.f32 %v1278_v30, %v1198_v28  ;;  %v1312_v34 = vpop.f32.mrb[33].mxu0  ;;  %v1391_v35 = vpop.f32.mrb[32].mxu1 }
 0x13a   :  { %v1313_v36 = vadd.f32 %v1312_v34, %v1311_v31  ;;  %v1392_v37 = vpop.f32.mrb[33].mxu1 }
 0x13b   :  { %v1393_v38 = vadd.f32 %v1392_v37, %v1391_v35 }
 0x13c   :  { %v663_v39 = vadd.f32 %v1313_v36, %v2595_v47  ;;  %v1314_v41 = vpop.f32.mrb[34].mxu0 }
 0x13d   :  { %v1315_v42 = vpop.f32.mrb[35].mxu0  ;;  %v1394_v43 = vpop.f32.mrb[34].mxu1 }
 0x13e   :  { %v1316_v44 = vadd.f32 %v1315_v42, %v1314_v41  ;;  %v1395_v45 = vpop.f32.mrb[35].mxu1  ;;  %v2631_v46 = vadd.f32 %v1393_v38, %v663_v39 }
 0x13f   :  { %v1396_v49 = vadd.f32 %v1395_v45, %v1394_v43 }
 0x140   :  { %v668_v50 = vadd.f32 %v1316_v44, %v2597_v54  ;;  %v1317_v51 = vpop.f32.mrb[36].mxu0 }
 0x141   :  { %v1318_v52 = vpop.f32.mrb[37].mxu0  ;;  %v1397_v53 = vpop.f32.mrb[36].mxu1 }
 0x142   :  { %v1319_v55 = vadd.f32 %v1318_v52, %v1317_v51  ;;  %v1398_v57 = vpop.f32.mrb[37].mxu1  ;;  %v2634_v58 = vadd.f32 %v1396_v49, %v668_v50 }
 0x143   :  { %v1399_v59 = vadd.f32 %v1398_v57, %v1397_v53 }
 0x144   :  { %v673_v47 = vadd.f32 %v1319_v55, %v2599_v61  ;;  %v1320_v60 = vpop.f32.mrb[38].mxu0 }
 0x145   :  { %v1321_v62 = vpop.f32.mrb[39].mxu0  ;;  %v1400_v63 = vpop.f32.mrb[38].mxu1 }
 0x146   :  { %v1322_v1 = vadd.f32 %v1321_v62, %v1320_v60  ;;  %v1401_v2 = vpop.f32.mrb[39].mxu1  ;;  %v2637_v3 = vadd.f32 %v1399_v59, %v673_v47 }
 0x147   :  { %v1402_v5 = vadd.f32 %v1401_v2, %v1400_v63 }
 0x148   :  { %v678_v54 = vadd.f32 %v1322_v1, %v2601_v4  ;;  %v1323_v6 = vpop.f32.mrb[40].mxu0 }
 0x149   :  { %v1324_v7 = vpop.f32.mrb[41].mxu0  ;;  %v1403_v9 = vpop.f32.mrb[40].mxu1 }
 0x14a   :  { %v1325_v10 = vadd.f32 %v1324_v7, %v1323_v6  ;;  %v1404_v12 = vpop.f32.mrb[41].mxu1  ;;  %v2640_v13 = vadd.f32 %v1402_v5, %v678_v54 }
 0x14b   :  { %v1405_v14 = vadd.f32 %v1404_v12, %v1403_v9 }
 0x14c   :  { %v683_v61 = vadd.f32 %v1325_v10, %v2603_v11  ;;  %v1326_v15 = vpop.f32.mrb[42].mxu0 }
 0x14d   :  { %v1327_v17 = vpop.f32.mrb[43].mxu0  ;;  %v1406_v19 = vpop.f32.mrb[42].mxu1 }
 0x14e   :  { %v1328_v20 = vadd.f32 %v1327_v17, %v1326_v15  ;;  %v1407_v21 = vpop.f32.mrb[43].mxu1  ;;  %v2643_v22 = vadd.f32 %v1405_v14, %v683_v61 }
 0x14f   :  { %v1408_v23 = vadd.f32 %v1407_v21, %v1406_v19 }
 0x150   :  { %v688_v4 = vadd.f32 %v1328_v20, %v2605_v18  ;;  %v1329_v25 = vpop.f32.mrb[44].mxu0 }
 0x151   :  { %v1330_v27 = vpop.f32.mrb[45].mxu0  ;;  %v1409_v28 = vpop.f32.mrb[44].mxu1 }
 0x152   :  { %v1331_v29 = vadd.f32 %v1330_v27, %v1329_v25  ;;  %v1410_v30 = vpop.f32.mrb[45].mxu1  ;;  %v2646_v31 = vadd.f32 %v1408_v23, %v688_v4 }
 0x153   :  { %v1411_v34 = vadd.f32 %v1410_v30, %v1409_v28 }
 0x154   :  { %v693_v11 = vadd.f32 %v1331_v29, %v2610_v26  ;;  %v1332_v35 = vpop.f32.mrb[46].mxu0 }
 0x155   :  { %v1333_v36 = vpop.f32.mrb[47].mxu0  ;;  %v1412_v37 = vpop.f32.mrb[46].mxu1 }
 0x156   :  { %v1334_v38 = vadd.f32 %v1333_v36, %v1332_v35  ;;  %v1413_v39 = vpop.f32.mrb[47].mxu1  ;;  %v2649_v41 = vadd.f32 %v1411_v34, %v693_v11 }
 0x157   :  { %v1414_v42 = vadd.f32 %v1413_v39, %v1412_v37 }
 0x158   :  { %v698_v18 = vadd.f32 %v1334_v38, %v2612_v33  ;;  %v1335_v43 = vpop.f32.mrb[48].mxu0 }
 0x159   :  { %v1336_v44 = vpop.f32.mrb[49].mxu0  ;;  %v1415_v45 = vpop.f32.mrb[48].mxu1 }
 0x15a   :  { %v1337_v49 = vadd.f32 %v1336_v44, %v1335_v43  ;;  %v1416_v50 = vpop.f32.mrb[49].mxu1  ;;  %v2652_v51 = vadd.f32 %v1414_v42, %v698_v18 }
 0x15b   :  { %v1417_v52 = vadd.f32 %v1416_v50, %v1415_v45 }
 0x15c   :  { %v703_v26 = vadd.f32 %v1337_v49, %v2614_v40  ;;  %v1338_v53 = vpop.f32.mrb[50].mxu0 }
 0x15d   :  { %v1339_v55 = vpop.f32.mrb[51].mxu0  ;;  %v1418_v57 = vpop.f32.mrb[50].mxu1 }
 0x15e   :  { %v1340_v59 = vadd.f32 %v1339_v55, %v1338_v53  ;;  %v1419_v47 = vpop.f32.mrb[51].mxu1  ;;  %v848_v60 = vadd.f32 %v1417_v52, %v703_v26 }
 0x15f   :  { %v1420_v62 = vadd.f32 %v1419_v47, %v1418_v57 }
 0x160   :  { %v708_v63 = vadd.f32 %v1340_v59, %v2616_v48  ;;  %v1341_v33 = vpop.f32.mrb[52].mxu0 }
 0x161   :  { %v1342_v1 = vpop.f32.mrb[53].mxu0  ;;  %v1421_v2 = vpop.f32.mrb[52].mxu1 }
 0x162   :  { %v1343_v5 = vadd.f32 %v1342_v1, %v1341_v33  ;;  %v1422_v54 = vpop.f32.mrb[53].mxu1  ;;  %v853_v6 = vadd.f32 %v1420_v62, %v708_v63 }
 0x163   :  { %v1423_v7 = vadd.f32 %v1422_v54, %v1421_v2 }
 0x164   :  { %v713_v9 = vadd.f32 %v1343_v5, %v2618_v56  ;;  %v1344_v10 = vpop.f32.mrb[54].mxu0 }
 0x165   :  { %v1345_v40 = vpop.f32.mrb[55].mxu0  ;;  %v1424_v12 = vpop.f32.mrb[54].mxu1 }
 0x166   :  { %v1346_v14 = vadd.f32 %v1345_v40, %v1344_v10  ;;  %v1425_v61 = vpop.f32.mrb[55].mxu1  ;;  %v858_v15 = vadd.f32 %v1423_v7, %v713_v9 }
 0x167   :  { %v1426_v17 = vadd.f32 %v1425_v61, %v1424_v12 }
 0x168   :  { %v718_v19 = vadd.f32 %v1346_v14, %v2620_v0  ;;  %v1347_v20 = vpop.f32.mrb[56].mxu0 }
 0x169   :  { %v1348_v48 = vpop.f32.mrb[57].mxu0  ;;  %v1427_v21 = vpop.f32.mrb[56].mxu1 }
 0x16a   :  { %v1349_v23 = vadd.f32 %v1348_v48, %v1347_v20  ;;  %v1428_v4 = vpop.f32.mrb[57].mxu1  ;;  %v863_v25 = vadd.f32 %v1426_v17, %v718_v19 }
 0x16b   :  { %v1429_v27 = vadd.f32 %v1428_v4, %v1427_v21 }
 0x16c   :  { %v723_v28 = vadd.f32 %v1349_v23, %v2622_v8  ;;  %v1350_v29 = vpop.f32.mrb[58].mxu0 }
 0x16d   :  { %v1351_v56 = vpop.f32.mrb[59].mxu0  ;;  %v1430_v30 = vpop.f32.mrb[58].mxu1 }
 0x16e   :  { %v1352_v34 = vadd.f32 %v1351_v56, %v1350_v29  ;;  %v1431_v11 = vpop.f32.mrb[59].mxu1  ;;  %v868_v35 = vadd.f32 %v1429_v27, %v723_v28 }
 0x16f   :  { %v1432_v36 = vadd.f32 %v1431_v11, %v1430_v30 }
 0x170   :  { %v728_v37 = vadd.f32 %v1352_v34, %v2624_v16  ;;  %v1353_v38 = vpop.f32.mrb[60].mxu0 }
 0x171   :  { %v1354_v0 = vpop.f32.mrb[61].mxu0  ;;  %v1433_v39 = vpop.f32.mrb[60].mxu1 }
 0x172   :  { %v1355_v42 = vadd.f32 %v1354_v0, %v1353_v38  ;;  %v1434_v18 = vpop.f32.mrb[61].mxu1  ;;  %v873_v43 = vadd.f32 %v1432_v36, %v728_v37 }
 0x173   :  { %v1435_v44 = vadd.f32 %v1434_v18, %v1433_v39 }
 0x174   :  { %v733_v45 = vadd.f32 %v1355_v42, %v2626_v24  ;;  %v1356_v49 = vpop.f32.mrb[62].mxu0 }
 0x175   :  { %v1357_v8 = vpop.f32.mrb[63].mxu0  ;;  %v1436_v50 = vpop.f32.mrb[62].mxu1 }
 0x176   :  { %v1358_v52 = vadd.f32 %v1357_v8, %v1356_v49  ;;  %v1437_v26 = vpop.f32.mrb[63].mxu1  ;;  %v2661_v53 = vadd.f32 %v1435_v44, %v733_v45 }
 0x177   :  { %v1438_v55 = vadd.f32 %v1437_v26, %v1436_v50 }
 0x178   :  { %v738_v57 = vadd.f32 %v1358_v52, %v2628_v32  ;;  %v1505_v16 = vpop.f32.mrb[64].mxu0 }
 0x179   :  { %v958_v59 = vadd.f32 %v1505_v16, %v2634_v58  ;;  %v1517_v47 = vpop.f32.mrb[64].mxu1  ;;  %v952_v62 = vpop.f32.mrb[65].mxu0 }
 0x17a   :  { %v2665_v63 = vadd.f32 %v1517_v47, %v853_v6  ;;  %v953_v33 = vadd.f32 %v952_v62, %v2631_v46  ;;  %v992_v24 = vpop.f32.mrb[65].mxu1  ;;  %v883_v1 = vadd.f32 %v1438_v55, %v738_v57 }
 0x17b   :  { %1032 = vst [vmem:[%s2742_s2 + $0x8] sm:$0xff] %v958_v59  ;;  %v1073_v2 = vmul.f32 %v958_v59, %v958_v59  ;;  %v993_v5 = vadd.f32 %v992_v24, %v848_v60 }
 0x17c   :  { %1040 = vst [vmem:[%s2742_s2 + $0x48] sm:$0xff] %v2665_v63  ;;  %1031 = vst [vmem:[%s2742_s2] sm:$0xff] %v953_v33  ;;  %v1048_v32 = vadd.f32 %v958_v59, %v953_v33  ;;  %v1072_v58 = vmul.f32 %v953_v33, %v953_v33  ;;  %v1508_v46 = vpop.f32.mrb[66].mxu0  ;;  %v1081_v8 = vmul.f32 %v2665_v63, %v2665_v63 }
 0x17d   :  { %1039 = vst [vmem:[%s2742_s2 + $0x40] sm:$0xff] %v993_v5  ;;  %v968_v54 = vadd.f32 %v1508_v46, %v2640_v13  ;;  %v1520_v6 = vpop.f32.mrb[66].mxu1  ;;  %v962_v60 = vpop.f32.mrb[67].mxu0  ;;  %v1080_v44 = vmul.f32 %v993_v5, %v993_v5 }
 0x17e   :  { %v1088_v7 = vadd.f32 %v1073_v2, %v1072_v58  ;;  %v1008_v9 = vadd.f32 %v1520_v6, %v863_v25  ;;  %v963_v10 = vadd.f32 %v962_v60, %v2637_v3  ;;  %v1002_v40 = vpop.f32.mrb[67].mxu1 }
 0x17f   :  { %1034 = vst [vmem:[%s2742_s2 + $0x18] sm:$0xff] %v968_v54  ;;  %v1003_v12 = vadd.f32 %v1002_v40, %v858_v15  ;;  %v1075_v17 = vmul.f32 %v968_v54, %v968_v54 }
 0x180   :  { %1042 = vst [vmem:[%s2742_s2 + $0x58] sm:$0xff] %v1008_v9  ;;  %1033 = vst [vmem:[%s2742_s2 + $0x10] sm:$0xff] %v963_v10  ;;  %v1049_v13 = vadd.f32 %v1048_v32, %v963_v10  ;;  %v1074_v14 = vmul.f32 %v963_v10, %v963_v10  ;;  %v1511_v61 = vpop.f32.mrb[68].mxu0  ;;  %v1083_v57 = vmul.f32 %v1008_v9, %v1008_v9 }
 0x181   :  { %1041 = vst [vmem:[%s2742_s2 + $0x50] sm:$0xff] %v1003_v12  ;;  %v978_v3 = vadd.f32 %v1511_v61, %v2646_v31  ;;  %v1523_v19 = vpop.f32.mrb[68].mxu1  ;;  %v972_v15 = vpop.f32.mrb[69].mxu0  ;;  %v1082_v26 = vmul.f32 %v1003_v12, %v1003_v12 }
 0x182   :  { %v1089_v20 = vadd.f32 %v1088_v7, %v1074_v14  ;;  %v1018_v48 = vadd.f32 %v1523_v19, %v873_v43  ;;  %v973_v21 = vadd.f32 %v972_v15, %v2643_v22  ;;  %v1050_v23 = vadd.f32 %v1049_v13, %v968_v54  ;;  %v1012_v4 = vpop.f32.mrb[69].mxu1  ;;  %v1071_v15 = vld [vmem:[%s2741_s3 + $0x1] sm:$0x1] }
 0x183   :  { %1036 = vst [vmem:[%s2742_s2 + $0x28] sm:$0xff] %v978_v3  ;;  %v1013_v25 = vadd.f32 %v1012_v4, %v868_v35  ;;  %v1077_v22 = vmul.f32 %v978_v3, %v978_v3 }
 0x184   :  { %1044 = vst [vmem:[%s2742_s2 + $0x68] sm:$0xff] %v1018_v48  ;;  %1035 = vst [vmem:[%s2742_s2 + $0x20] sm:$0xff] %v973_v21  ;;  %v1051_v31 = vadd.f32 %v1050_v23, %v973_v21  ;;  %v1076_v27 = vmul.f32 %v973_v21, %v973_v21  ;;  %v1090_v28 = vadd.f32 %v1089_v20, %v1075_v17  ;;  %v1514_v29 = vpop.f32.mrb[70].mxu0  ;;  %v1047_v17 = vld [vmem:[%s2741_s3] sm:$0x1] }
 0x185   :  { %1043 = vst [vmem:[%s2742_s2 + $0x60] sm:$0xff] %v1013_v25  ;;  %v988_v56 = vadd.f32 %v1514_v29, %v2652_v51  ;;  %v1526_v30 = vpop.f32.mrb[70].mxu1  ;;  %v982_v34 = vpop.f32.mrb[71].mxu0  ;;  %v1084_v47 = vmul.f32 %v1013_v25, %v1013_v25  ;;  %v1085_v24 = vmul.f32 %v1018_v48, %v1018_v48 }
 0x186   :  { %v1091_v11 = vadd.f32 %v1090_v28, %v1076_v27  ;;  %v1028_v35 = vadd.f32 %v1526_v30, %v883_v1  ;;  %v983_v36 = vadd.f32 %v982_v34, %v2649_v41  ;;  %v1052_v37 = vadd.f32 %v1051_v31, %v978_v3  ;;  %v1022_v38 = vpop.f32.mrb[71].mxu1 }
 0x187   :  { %1038 = vst [vmem:[%s2742_s2 + $0x38] sm:$0xff] %v988_v56  ;;  %v1023_v0 = vadd.f32 %v1022_v38, %v2661_v53  ;;  %v1079_v41 = vmul.f32 %v988_v56, %v988_v56 }
 0x188   :  { %1046 = vst [vmem:[%s2742_s2 + $0x78] sm:$0xff] %v1028_v35  ;;  %1037 = vst [vmem:[%s2742_s2 + $0x30] sm:$0xff] %v983_v36  ;;  %v1053_v51 = vadd.f32 %v1052_v37, %v983_v36  ;;  %v1078_v39 = vmul.f32 %v983_v36, %v983_v36  ;;  %v1092_v42 = vadd.f32 %v1091_v11, %v1077_v22 }
 0x189   :  { %1045 = vst [vmem:[%s2742_s2 + $0x70] sm:$0xff] %v1023_v0  ;;  %v1086_v32 = vmul.f32 %v1023_v0, %v1023_v0  ;;  %v1087_v46 = vmul.f32 %v1028_v35, %v1028_v35 }
 0x18a   :  { %v1054_v18 = vadd.f32 %v1053_v51, %v988_v56  ;;  %v1093_v43 = vadd.f32 %v1092_v42, %v1078_v39 }
 0x18c   :  { %v1055_v45 = vadd.f32 %v1054_v18, %v993_v5  ;;  %v1094_v49 = vadd.f32 %v1093_v43, %v1079_v41 }
 0x18e   :  { %v1056_v50 = vadd.f32 %v1055_v45, %v2665_v63  ;;  %v1095_v52 = vadd.f32 %v1094_v49, %v1080_v44 }
 0x190   :  { %v1096_v53 = vadd.f32 %v1095_v52, %v1081_v8  ;;  %v1057_v55 = vadd.f32 %v1056_v50, %v1003_v12 }
 0x192   :  { %v1058_v16 = vadd.f32 %v1057_v55, %v1008_v9  ;;  %v1097_v59 = vadd.f32 %v1096_v53, %v1082_v26 }
 0x194   :  { %v1059_v62 = vadd.f32 %v1058_v16, %v1013_v25  ;;  %v1098_v33 = vadd.f32 %v1097_v59, %v1083_v57 }
 0x196   :  { %v1060_v1 = vadd.f32 %v1059_v62, %v1018_v48  ;;  %v1099_v2 = vadd.f32 %v1098_v33, %v1084_v47 }
 0x198   :  { %v1061_v5 = vadd.f32 %v1060_v1, %v1023_v0  ;;  %v1100_v58 = vadd.f32 %v1099_v2, %v1085_v24 }
 0x19a   :  { %v1062_v54 = vadd.f32 %v1061_v5, %v1028_v35  ;;  %v1101_v6 = vadd.f32 %v1100_v58, %v1086_v32 }
 0x19c   :  { %v1063_v63 = vrot.slane %v1062_v54, 4  ;;  %v1102_v60 = vadd.f32 %v1101_v6, %v1087_v46 }
 0x19e   :  { %v1064_v7 = vadd.f32 %v1063_v63, %v1062_v54  ;;  %v1103_v10 = vrot.slane %v1102_v60, 4 }
 0x1a0   :  { %v1065_v40 = vrot.slane %v1064_v7, 2  ;;  %v1104_v12 = vadd.f32 %v1103_v10, %v1102_v60 }
 0x1a2   :  { %v1066_v9 = vadd.f32 %v1065_v40, %v1064_v7  ;;  %v1105_v13 = vrot.slane %v1104_v12, 2 }
 0x1a4   :  { %v1067_v14 = vrot.slane %v1066_v9, 1  ;;  %v1106_v61 = vadd.f32 %v1105_v13, %v1104_v12 }
 0x1a6   :  { %v1068_v3 = vadd.f32 %v1067_v14, %v1066_v9  ;;  %v1107_v19 = vrot.slane %v1106_v61, 1 }
 0x1a8   :  { %v1069_v20 = vadd.f32 %v1068_v3, %v1047_v17  ;;  %v1108_v48 = vadd.f32 %v1107_v19, %v1106_v61 }
 0x1aa   :  { %1070 = vst [vmem:[%s2741_s3] sm:$0x1] %v1069_v20  ;;  %v1109_v21 = vadd.f32 %v1108_v48, %v1071_v15 }
 0x1ac   :  { %1110 = vst [vmem:[%s2741_s3 + $0x1] sm:$0x1] %v1109_v21 }

</bundles_post_ra>
